<compile_context>
chip_gen: v7x
topology: tpu7x:2x2x1
jax: 0.10.0
libtpu: 0.0.40
codegen_flags: <defaults>
</compile_context>

<pallas_src>
import functools

import jax
import jax.numpy as jnp
from jax.experimental import pallas as pl
from jax.experimental.pallas import tpu as pltpu


def _round_up(x, m):
    return ((x + m - 1) // m) * m


def _class_attention_kernel(q_ref, x_ref, wk_ref, hmapt_ref, wv_ref, wp_ref,
                            bp_ref, o_ref, m_s, l_s, a_s,
                            *, n_valid, kv_tile, mask_last):
    """Grid = (batch, kv_tile). One CLS query attends to a tile of tokens.

    Online softmax state (per head, column form):
      m_s [NH, 1] running max, l_s [NH, 1] running denom,
      a_s [NH, C] running (un-normalized) softmax^T @ x accumulator.
    """
    j = pl.program_id(1)

    # -- first KV tile of this batch row: reset the online-softmax state --
    @pl.when(j == 0)
    def _init():
        m_s[...] = jnp.full_like(m_s, -jnp.inf)
        l_s[...] = jnp.zeros_like(l_s)
        a_s[...] = jnp.zeros_like(a_s)

    x = x_ref[...]                                                     # [tn, C]
    k = jnp.dot(x, wk_ref[...], preferred_element_type=jnp.float32)   # [tn, C] f32
    p = (k * q_ref[...]).astype(x.dtype)                              # [tn, C]

    # Per-head logits in transposed layout (NT matmul, natively supported):
    #   s_t[h, n] = sum_{c in head h} q_scaled[c] * k[n, c]
    s_t = jax.lax.dot_general(
        hmapt_ref[...], p,
        dimension_numbers=(((1,), (1,)), ((), ())),
        preferred_element_type=jnp.float32)                            # [NH, tn]

    if mask_last:  # static: only emitted when N was padded up to the tile size
        col = j * kv_tile + jax.lax.broadcasted_iota(jnp.int32, s_t.shape, 1)
        s_t = jnp.where(col < n_valid, s_t, -1e30)

    # ---------------- online softmax over the token (lane) axis ----------------
    m_prev = m_s[...]                                                  # [NH, 1]
    m_new = jnp.maximum(m_prev, jnp.max(s_t, axis=1, keepdims=True))   # [NH, 1]
    alpha = jnp.exp(m_prev - m_new)                                    # [NH, 1]
    e_t = jnp.exp(s_t - m_new)                                         # [NH, tn]
    l_s[...] = alpha * l_s[...] + jnp.sum(e_t, axis=1, keepdims=True)
    m_s[...] = m_new

    # Accumulate un-normalized per-head weighted sums of x (NN matmul on MXU).
    a_s[...] = alpha * a_s[...] + jnp.dot(
        e_t.astype(x.dtype), x, preferred_element_type=jnp.float32)    # [NH, C]

    # -- last KV tile: apply Wv once, select own-head channels, project out --
    @pl.when(j == pl.num_programs(1) - 1)
    def _finalize():
        inv_l = pl.reciprocal(l_s[...], approx=False)                  # [NH, 1]
        a_norm = (a_s[...] * inv_l).astype(wv_ref.dtype)               # [NH, C]
        per_head = jnp.dot(a_norm, wv_ref[...],
                           preferred_element_type=jnp.float32)         # [NH, C]
        ctx = jnp.sum(hmapt_ref[...].astype(jnp.float32) * per_head,
                      axis=0, keepdims=True)                           # [1, C]
        out = jnp.dot(ctx.astype(wp_ref.dtype), wp_ref[...],
                      preferred_element_type=jnp.float32) + bp_ref[...]
        o_ref[...] = out.astype(o_ref.dtype)


def class_attention_pallas(x, wq, wk, wv, wp, bp, *, num_heads, qk_scale=None,
                           kv_tile=None, compute_dtype=jnp.bfloat16,
                           out_dtype=None):
    """x: [B, N, C]; wq/wk/wv/wp: [C, C] (already [in, out]); bp: [C]."""
    B, N, C = x.shape
    if C % num_heads != 0:
        raise ValueError("dim must be divisible by num_heads")
    head_dim = C // num_heads
    scale = float(qk_scale) if qk_scale is not None else head_dim ** -0.5
    if out_dtype is None:
        out_dtype = x.dtype

    # Hoisted CLS-query projection (review item): tiny XLA matmul, kept in f32
    # and pre-scaled, so the kernel never touches Wq.
    q = jnp.dot(x[:, 0, :], wq, precision=jax.lax.Precision.HIGHEST,
                preferred_element_type=jnp.float32) * scale
    q = q.reshape(B, 1, C)

    # bf16 feed of the MXU-heavy operands by default (review item); softmax
    # stats / accumulation / bias stay f32 inside the kernel.
    if compute_dtype is not None:
        x = x.astype(compute_dtype)
        wk, wv, wp = (w.astype(compute_dtype) for w in (wk, wv, wp))

    itemsize = jnp.dtype(x.dtype).itemsize
    row_mult = 8 * max(1, 4 // itemsize)          # 8 rows f32 / 16 rows bf16
    default_cap = 512 * max(1, 4 // itemsize)     # 512 (f32) / 1024 (bf16)
    if kv_tile is None:
        kv_tile = default_cap
    kv_tile = max(row_mult,
                  _round_up(min(kv_tile, _round_up(N, row_mult)), row_mult))
    n_pad = _round_up(N, kv_tile)
    if n_pad != N:
        x = jnp.pad(x, ((0, 0), (0, n_pad - N), (0, 0)))
    num_kv_tiles = n_pad // kv_tile
    mask_last = n_pad != N

    # 0/1 head-membership map, transposed layout [NH, C] (exact in bf16).
    heads_of_c = jnp.arange(C, dtype=jnp.int32) // head_dim
    hmapt = (jnp.arange(num_heads, dtype=jnp.int32)[:, None]
             == heads_of_c[None, :]).astype(x.dtype)                  # [NH, C]
    bp2 = bp.reshape(1, C).astype(jnp.float32)

    kernel = functools.partial(_class_attention_kernel, n_valid=N,
                               kv_tile=kv_tile, mask_last=mask_last)

    # VMEM budget (review item): no double hedge, query physical VMEM and keep
    # ~16 MiB headroom for compiler-internal scratch.
    try:
        phys_vmem = int(getattr(pltpu.get_tpu_info(), "vmem_capacity_bytes",
                                64 * 1024 * 1024))
    except Exception:
        phys_vmem = 64 * 1024 * 1024
    vmem_cap = max(phys_vmem - 16 * 1024 * 1024, 32 * 1024 * 1024)

    w_item = jnp.dtype(wk.dtype).itemsize
    o_item = jnp.dtype(out_dtype).itemsize

    def vmem_estimate(n_weight_buffers):
        return (2 * kv_tile * C * itemsize                              # x tile
                + 2 * C * 4                                             # q
                + n_weight_buffers * (3 * C * C + num_heads * C) * w_item
                + n_weight_buffers * C * 4                              # bias
                + (2 * num_heads + num_heads * C) * 4                   # scratch
                + 2 * C * o_item)                                       # output

    flops = B * (2 * n_pad * C * C                       # K projection
                 + 2 * n_pad * C * num_heads             # logits
                 + 2 * n_pad * num_heads * C             # softmax^T @ x
                 + 2 * num_heads * C * C                 # A @ Wv (finalize)
                 + 2 * C * C)                            # output projection
    cost = pl.CostEstimate(
        flops=int(flops),
        transcendentals=int(B * num_heads * (n_pad + num_kv_tiles)),
        bytes_accessed=int(x.size * itemsize + B * C * 4
                           + (3 * C * C + num_heads * C) * w_item + C * 4
                           + B * C * o_item))

    def build_call(single_buffer_weights):
        if single_buffer_weights:
            # Grid-invariant operands: fetched once, kept resident, ONE buffer.
            inv_kwargs = dict(pipeline_mode=pl.Buffered(1))
            n_weight_buffers = 1
        else:
            inv_kwargs = {}
            n_weight_buffers = 2
        vmem_limit = int(min(vmem_cap,
                             max(vmem_estimate(n_weight_buffers)
                                 + 4 * 1024 * 1024, 32 * 1024 * 1024)))
        return pl.pallas_call(
            kernel,
            out_shape=jax.ShapeDtypeStruct((B, 1, C), out_dtype),
            grid_spec=pltpu.PrefetchScalarGridSpec(
                num_scalar_prefetch=0,
                grid=(B, num_kv_tiles),
                in_specs=[
                    pl.BlockSpec((None, 1, C), lambda b, j: (b, 0, 0)),        # q
                    pl.BlockSpec((None, kv_tile, C), lambda b, j: (b, j, 0)),  # x
                    pl.BlockSpec((C, C), lambda b, j: (0, 0), **inv_kwargs),   # Wk
                    pl.BlockSpec((num_heads, C), lambda b, j: (0, 0),
                                 **inv_kwargs),                                # head map^T
                    pl.BlockSpec((C, C), lambda b, j: (0, 0), **inv_kwargs),   # Wv
                    pl.BlockSpec((C, C), lambda b, j: (0, 0), **inv_kwargs),   # Wproj
                    pl.BlockSpec((1, C), lambda b, j: (0, 0), **inv_kwargs),   # b_proj
                ],
                out_specs=pl.BlockSpec((None, 1, C), lambda b, j: (b, 0, 0)),
                scratch_shapes=[
                    pltpu.VMEM((num_heads, 1), jnp.float32),   # running max
                    pltpu.VMEM((num_heads, 1), jnp.float32),   # running denom
                    pltpu.VMEM((num_heads, C), jnp.float32),   # softmax^T @ x
                ]),
            compiler_params=pltpu.CompilerParams(
                dimension_semantics=("parallel", "arbitrary"),
                vmem_limit_bytes=vmem_limit),
            cost_estimate=cost,
        )

    args = (q, x, wk, hmapt, wv, wp, bp2)
    try:
        out = build_call(True)(*args)
    except Exception:
        # Fallback for jax versions without pl.Buffered(1) single-buffering.
        out = build_call(False)(*args)
    return out


def class_attention_reference(x, wq, wk, wv, wp, bp, *, num_heads, qk_scale=None):
    """Pure-JAX replica of the PyTorch Class_Attention.forward (dropout p=0)."""
    B, N, C = x.shape
    hd = C // num_heads
    scale = qk_scale if qk_scale is not None else hd ** -0.5
    hi = jax.lax.Precision.HIGHEST
    q = jnp.dot(x[:, 0], wq, precision=hi).reshape(B, 1, num_heads, hd)
    q = q.transpose(0, 2, 1, 3) * scale
    k = jnp.dot(x, wk, precision=hi).reshape(B, N, num_heads, hd).transpose(0, 2, 1, 3)
    v = jnp.dot(x, wv, precision=hi).reshape(B, N, num_heads, hd).transpose(0, 2, 1, 3)
    attn = jnp.einsum("bhqd,bhkd->bhqk", q, k, precision=hi)
    attn = jax.nn.softmax(attn, axis=-1)
    ctx = jnp.einsum("bhqk,bhkd->bhqd", attn, v, precision=hi)
    x_cls = jnp.swapaxes(ctx, 1, 2).reshape(B, 1, C)
    return jnp.dot(x_cls, wp, precision=hi) + bp


if __name__ == "__main__":
    # Small shapes consistent with the module: B=2, seq N=8, dim C=32, 8 heads.
    B, N, C = 2, 8, 32
    num_heads = 8

    key = jax.random.PRNGKey(0)
    kx, kq, kk, kv, kp, kb, kx2 = jax.random.split(key, 7)
    x = jax.random.normal(kx, (B, N, C), dtype=jnp.float32)

    # Deterministic parameter init (uniform, roughly nn.Linear's scale).
    # Weights are stored pre-transposed as [in, out] so forward is x @ W.
    bound = 1.0 / (C ** 0.5)
    wq = jax.random.uniform(kq, (C, C), minval=-bound, maxval=bound, dtype=jnp.float32)
    wk = jax.random.uniform(kk, (C, C), minval=-bound, maxval=bound, dtype=jnp.float32)
    wv = jax.random.uniform(kv, (C, C), minval=-bound, maxval=bound, dtype=jnp.float32)
    wp = jax.random.uniform(kp, (C, C), minval=-bound, maxval=bound, dtype=jnp.float32)
    bp = jax.random.uniform(kb, (C,), minval=-bound, maxval=bound, dtype=jnp.float32)

    y_ref = class_attention_reference(x, wq, wk, wv, wp, bp, num_heads=num_heads)

    # 1) pure f32 path (tight-ish check)
    y = class_attention_pallas(x, wq, wk, wv, wp, bp, num_heads=num_heads,
                               compute_dtype=None)
    y = jax.block_until_ready(y)
    assert y.shape == (B, 1, C)
    assert jnp.allclose(y, y_ref, atol=5e-3, rtol=5e-3), "f32 mismatch vs reference"

    # 2) default path: bf16-fed matmuls with f32 softmax / accumulation
    y_bf = class_attention_pallas(x, wq, wk, wv, wp, bp, num_heads=num_heads)
    y_bf = jax.block_until_ready(y_bf)
    assert jnp.allclose(y_bf, y_ref, atol=5e-2, rtol=5e-2), "bf16 mismatch vs reference"

    # 3) longer, ragged sequence: multi-tile online softmax + padded-row masking
    N2 = 40
    x2 = jax.random.normal(kx2, (B, N2, C), dtype=jnp.float32)
    y2 = class_attention_pallas(x2, wq, wk, wv, wp, bp, num_heads=num_heads,
                                kv_tile=16, compute_dtype=None)
    y2 = jax.block_until_ready(y2)
    y2_ref = class_attention_reference(x2, wq, wk, wv, wp, bp, num_heads=num_heads)
    assert jnp.allclose(y2, y2_ref, atol=5e-3, rtol=5e-3), "multi-tile mismatch vs reference"

    print("KERNEL_OK")
</pallas_src>

<mosaic_0001>
module attributes {stable_mosaic.version = 11 : i64} {
  func.func @_class_attention_kernel(%arg0: i32, %arg1: i32, %arg2: memref<1x1x32xf32, #tpu.memory_space<vmem>>, %arg3: memref<1x8x32xf32, #tpu.memory_space<vmem>>, %arg4: memref<32x32xf32, #tpu.memory_space<vmem>>, %arg5: memref<8x32xf32, #tpu.memory_space<vmem>>, %arg6: memref<32x32xf32, #tpu.memory_space<vmem>>, %arg7: memref<32x32xf32, #tpu.memory_space<vmem>>, %arg8: memref<1x32xf32, #tpu.memory_space<vmem>>, %arg9: memref<1x1x32xf32, #tpu.memory_space<vmem>>, %arg10: memref<8x1xf32, #tpu.memory_space<vmem>>, %arg11: memref<8x1xf32, #tpu.memory_space<vmem>>, %arg12: memref<8x32xf32, #tpu.memory_space<vmem>>) attributes {dimension_semantics = [#tpu.dimension_semantics<parallel>, #tpu.dimension_semantics<arbitrary>], iteration_bounds = array<i64: 2, 1>, scalar_prefetch = 0 : i64, scratch_operands = 3 : i64, tpu.core_type = #tpu.core_type<tc>, window_params = [{transform_indices = @transform_0, window_bounds = array<i64: 1, 1, 32>}, {transform_indices = @transform_1, window_bounds = array<i64: 1, 8, 32>}, {pipeline_mode = #tpu.pipeline_mode<synchronous>, transform_indices = @transform_2, window_bounds = array<i64: 32, 32>}, {pipeline_mode = #tpu.pipeline_mode<synchronous>, transform_indices = @transform_3, window_bounds = array<i64: 8, 32>}, {pipeline_mode = #tpu.pipeline_mode<synchronous>, transform_indices = @transform_4, window_bounds = array<i64: 32, 32>}, {pipeline_mode = #tpu.pipeline_mode<synchronous>, transform_indices = @transform_5, window_bounds = array<i64: 32, 32>}, {pipeline_mode = #tpu.pipeline_mode<synchronous>, transform_indices = @transform_6, window_bounds = array<i64: 1, 32>}, {transform_indices = @transform_7, window_bounds = array<i64: 1, 1, 32>}]} {
    %c0_i32 = arith.constant 0 : i32
    %0 = arith.cmpi eq, %arg1, %c0_i32 : i32
    %1 = arith.extui %0 : i1 to i32
    %c0_i32_0 = arith.constant 0 : i32
    %2 = arith.cmpi ne, %1, %c0_i32_0 : i32
    scf.if %2 {
      %cst_28 = arith.constant 0xFF800000 : f32
      %38 = vector.broadcast %cst_28 : f32 to vector<8x1xf32>
      %c0_29 = arith.constant 0 : index
      %c0_30 = arith.constant 0 : index
      %39 = vector.load %arg10[%c0_29, %c0_30] : memref<8x1xf32, #tpu.memory_space<vmem>>, vector<8x1xf32>
      tpu.vector_store %arg10[%c0_29, %c0_30], %38 {strides = array<i32>} : memref<8x1xf32, #tpu.memory_space<vmem>>, vector<8x1xf32>,
      %cst_31 = arith.constant 0.000000e+00 : f32
      %40 = vector.broadcast %cst_31 : f32 to vector<8x1xf32>
      %c0_32 = arith.constant 0 : index
      %c0_33 = arith.constant 0 : index
      %41 = vector.load %arg11[%c0_32, %c0_33] : memref<8x1xf32, #tpu.memory_space<vmem>>, vector<8x1xf32>
      tpu.vector_store %arg11[%c0_32, %c0_33], %40 {strides = array<i32>} : memref<8x1xf32, #tpu.memory_space<vmem>>, vector<8x1xf32>,
      %cst_34 = arith.constant 0.000000e+00 : f32
      %42 = vector.broadcast %cst_34 : f32 to vector<8x32xf32>
      %c0_35 = arith.constant 0 : index
      %c0_36 = arith.constant 0 : index
      %43 = vector.load %arg12[%c0_35, %c0_36] : memref<8x32xf32, #tpu.memory_space<vmem>>, vector<8x32xf32>
      tpu.vector_store %arg12[%c0_35, %c0_36], %42 {strides = array<i32>} : memref<8x32xf32, #tpu.memory_space<vmem>>, vector<8x32xf32>,
    } else {
    }
    %c0 = arith.constant 0 : index
    %c0_1 = arith.constant 0 : index
    %c0_2 = arith.constant 0 : index
    %3 = vector.load %arg3[%c0, %c0_1, %c0_2] : memref<1x8x32xf32, #tpu.memory_space<vmem>>, vector<1x8x32xf32>
    %4 = vector.shape_cast %3 : vector<1x8x32xf32> to vector<8x32xf32>
    %c0_3 = arith.constant 0 : index
    %c0_4 = arith.constant 0 : index
    %5 = vector.load %arg4[%c0_3, %c0_4] : memref<32x32xf32, #tpu.memory_space<vmem>>, vector<32x32xf32>
    %cst = arith.constant dense<0.000000e+00> : vector<8x32xf32>
    %6 = tpu.matmul %4, %5, %cst {dimension_numbers = #tpu.dot_dimension_numbers<[1], [0], [0], [1], [0, 0, 1, 1], [], []>} : vector<8x32xf32>, vector<32x32xf32>, vector<8x32xf32> -> vector<8x32xf32>
    %c0_5 = arith.constant 0 : index
    %c0_6 = arith.constant 0 : index
    %c0_7 = arith.constant 0 : index
    %7 = vector.load %arg2[%c0_5, %c0_6, %c0_7] : memref<1x1x32xf32, #tpu.memory_space<vmem>>, vector<1x1x32xf32>
    %8 = vector.shape_cast %7 : vector<1x1x32xf32> to vector<1x32xf32>
    %9 = vector.broadcast %8 : vector<1x32xf32> to vector<8x32xf32>
    %10 = arith.mulf %6, %9 : vector<8x32xf32>
    %c0_8 = arith.constant 0 : index
    %c0_9 = arith.constant 0 : index
    %11 = vector.load %arg5[%c0_8, %c0_9] : memref<8x32xf32, #tpu.memory_space<vmem>>, vector<8x32xf32>
    %cst_10 = arith.constant dense<0.000000e+00> : vector<8x8xf32>
    %12 = tpu.matmul %11, %10, %cst_10 {dimension_numbers = #tpu.dot_dimension_numbers<[1], [1], [0], [0], [0, 0, 1, 0], [], []>} : vector<8x32xf32>, vector<8x32xf32>, vector<8x8xf32> -> vector<8x8xf32>
    %c0_11 = arith.constant 0 : index
    %c0_12 = arith.constant 0 : index
    %13 = vector.load %arg10[%c0_11, %c0_12] : memref<8x1xf32, #tpu.memory_space<vmem>>, vector<8x1xf32>
    %cst_13 = arith.constant dense<0xFF800000> : vector<8xf32>
    %14 = vector.multi_reduction <maximumf>, %12, %cst_13 [1] : vector<8x8xf32> to vector<8xf32>
    %15 = vector.shape_cast %14 : vector<8xf32> to vector<8x1xf32>
    %16 = arith.maximumf %13, %15 : vector<8x1xf32>
    %17 = arith.subf %13, %16 : vector<8x1xf32>
    %18 = math.exp %17 : vector<8x1xf32>
    %19 = vector.broadcast %16 : vector<8x1xf32> to vector<8x8xf32>
    %20 = arith.subf %12, %19 : vector<8x8xf32>
    %21 = math.exp %20 : vector<8x8xf32>
    %c0_14 = arith.constant 0 : index
    %c0_15 = arith.constant 0 : index
    %22 = vector.load %arg11[%c0_14, %c0_15] : memref<8x1xf32, #tpu.memory_space<vmem>>, vector<8x1xf32>
    %23 = arith.mulf %18, %22 : vector<8x1xf32>
    %cst_16 = arith.constant dense<0.000000e+00> : vector<8xf32>
    %24 = vector.multi_reduction <add>, %21, %cst_16 [1] : vector<8x8xf32> to vector<8xf32>
    %25 = vector.shape_cast %24 : vector<8xf32> to vector<8x1xf32>
    %26 = arith.addf %23, %25 : vector<8x1xf32>
    %c0_17 = arith.constant 0 : index
    %c0_18 = arith.constant 0 : index
    %27 = vector.load %arg11[%c0_17, %c0_18] : memref<8x1xf32, #tpu.memory_space<vmem>>, vector<8x1xf32>
    tpu.vector_store %arg11[%c0_17, %c0_18], %26 {strides = array<i32>} : memref<8x1xf32, #tpu.memory_space<vmem>>, vector<8x1xf32>,
    %c0_19 = arith.constant 0 : index
    %c0_20 = arith.constant 0 : index
    %28 = vector.load %arg10[%c0_19, %c0_20] : memref<8x1xf32, #tpu.memory_space<vmem>>, vector<8x1xf32>
    tpu.vector_store %arg10[%c0_19, %c0_20], %16 {strides = array<i32>} : memref<8x1xf32, #tpu.memory_space<vmem>>, vector<8x1xf32>,
    %c0_21 = arith.constant 0 : index
    %c0_22 = arith.constant 0 : index
    %29 = vector.load %arg12[%c0_21, %c0_22] : memref<8x32xf32, #tpu.memory_space<vmem>>, vector<8x32xf32>
    %30 = vector.broadcast %18 : vector<8x1xf32> to vector<8x32xf32>
    %31 = arith.mulf %30, %29 : vector<8x32xf32>
    %cst_23 = arith.constant dense<0.000000e+00> : vector<8x32xf32>
    %32 = tpu.matmul %21, %4, %cst_23 {dimension_numbers = #tpu.dot_dimension_numbers<[1], [0], [0], [1], [0, 0, 1, 1], [], []>} : vector<8x8xf32>, vector<8x32xf32>, vector<8x32xf32> -> vector<8x32xf32>
    %33 = arith.addf %31, %32 : vector<8x32xf32>
    %c0_24 = arith.constant 0 : index
    %c0_25 = arith.constant 0 : index
    %34 = vector.load %arg12[%c0_24, %c0_25] : memref<8x32xf32, #tpu.memory_space<vmem>>, vector<8x32xf32>
    tpu.vector_store %arg12[%c0_24, %c0_25], %33 {strides = array<i32>} : memref<8x32xf32, #tpu.memory_space<vmem>>, vector<8x32xf32>,
    %c0_i32_26 = arith.constant 0 : i32
    %35 = arith.cmpi eq, %arg1, %c0_i32_26 : i32
    %36 = arith.extui %35 : i1 to i32
    %c0_i32_27 = arith.constant 0 : i32
    %37 = arith.cmpi ne, %36, %c0_i32_27 : i32
    scf.if %37 {
      %c0_28 = arith.constant 0 : index
      %c0_29 = arith.constant 0 : index
      %38 = vector.load %arg11[%c0_28, %c0_29] : memref<8x1xf32, #tpu.memory_space<vmem>>, vector<8x1xf32>
      %39 = tpu.reciprocal %38 : vector<8x1xf32> -> vector<8x1xf32>
      %c0_30 = arith.constant 0 : index
      %c0_31 = arith.constant 0 : index
      %40 = vector.load %arg12[%c0_30, %c0_31] : memref<8x32xf32, #tpu.memory_space<vmem>>, vector<8x32xf32>
      %41 = vector.broadcast %39 : vector<8x1xf32> to vector<8x32xf32>
      %42 = arith.mulf %40, %41 : vector<8x32xf32>
      %c0_32 = arith.constant 0 : index
      %c0_33 = arith.constant 0 : index
      %43 = vector.load %arg6[%c0_32, %c0_33] : memref<32x32xf32, #tpu.memory_space<vmem>>, vector<32x32xf32>
      %cst_34 = arith.constant dense<0.000000e+00> : vector<8x32xf32>
      %44 = tpu.matmul %42, %43, %cst_34 {dimension_numbers = #tpu.dot_dimension_numbers<[1], [0], [0], [1], [0, 0, 1, 1], [], []>} : vector<8x32xf32>, vector<32x32xf32>, vector<8x32xf32> -> vector<8x32xf32>
      %c0_35 = arith.constant 0 : index
      %c0_36 = arith.constant 0 : index
      %45 = vector.load %arg5[%c0_35, %c0_36] : memref<8x32xf32, #tpu.memory_space<vmem>>, vector<8x32xf32>
      %46 = arith.mulf %45, %44 : vector<8x32xf32>
      %cst_37 = arith.constant dense<0.000000e+00> : vector<32xf32>
      %47 = vector.multi_reduction <add>, %46, %cst_37 [0] : vector<8x32xf32> to vector<32xf32>
      %48 = vector.shape_cast %47 : vector<32xf32> to vector<1x32xf32>
      %c0_38 = arith.constant 0 : index
      %c0_39 = arith.constant 0 : index
      %49 = vector.load %arg7[%c0_38, %c0_39] : memref<32x32xf32, #tpu.memory_space<vmem>>, vector<32x32xf32>
      %cst_40 = arith.constant dense<0.000000e+00> : vector<1x32xf32>
      %50 = tpu.matmul %48, %49, %cst_40 {dimension_numbers = #tpu.dot_dimension_numbers<[1], [0], [0], [1], [0, 0, 1, 1], [], []>} : vector<1x32xf32>, vector<32x32xf32>, vector<1x32xf32> -> vector<1x32xf32>
      %c0_41 = arith.constant 0 : index
      %c0_42 = arith.constant 0 : index
      %51 = vector.load %arg8[%c0_41, %c0_42] : memref<1x32xf32, #tpu.memory_space<vmem>>, vector<1x32xf32>
      %52 = arith.addf %50, %51 : vector<1x32xf32>
      %c0_43 = arith.constant 0 : index
      %c0_44 = arith.constant 0 : index
      %c0_45 = arith.constant 0 : index
      %53 = vector.load %arg9[%c0_43, %c0_44, %c0_45] : memref<1x1x32xf32, #tpu.memory_space<vmem>>, vector<1x1x32xf32>
      %54 = vector.shape_cast %53 : vector<1x1x32xf32> to vector<1x32xf32>
      %55 = vector.shape_cast %52 : vector<1x32xf32> to vector<1x1x32xf32>
      tpu.vector_store %arg9[%c0_43, %c0_44, %c0_45], %55 {strides = array<i32>} : memref<1x1x32xf32, #tpu.memory_space<vmem>>, vector<1x1x32xf32>,
    } else {
    }
    return
  }
  func.func @transform_0(%arg0: i32, %arg1: i32) -> (i32, i32, i32) {
    %c0_i32 = arith.constant 0 : i32
    %c0_i32_0 = arith.constant 0 : i32
    %c0_i32_1 = arith.constant 0 : i32
    return %arg0, %c0_i32, %c0_i32_0 : i32, i32, i32
  }
  func.func @transform_1(%arg0: i32, %arg1: i32) -> (i32, i32, i32) {
    %c0_i32 = arith.constant 0 : i32
    %c0_i32_0 = arith.constant 0 : i32
    return %arg0, %arg1, %c0_i32 : i32, i32, i32
  }
  func.func @transform_2(%arg0: i32, %arg1: i32) -> (i32, i32) {
    %c0_i32 = arith.constant 0 : i32
    %c0_i32_0 = arith.constant 0 : i32
    %c0_i32_1 = arith.constant 0 : i32
    return %c0_i32, %c0_i32_0 : i32, i32
  }
  func.func @transform_3(%arg0: i32, %arg1: i32) -> (i32, i32) {
    %c0_i32 = arith.constant 0 : i32
    %c0_i32_0 = arith.constant 0 : i32
    %c0_i32_1 = arith.constant 0 : i32
    return %c0_i32, %c0_i32_0 : i32, i32
  }
  func.func @transform_4(%arg0: i32, %arg1: i32) -> (i32, i32) {
    %c0_i32 = arith.constant 0 : i32
    %c0_i32_0 = arith.constant 0 : i32
    %c0_i32_1 = arith.constant 0 : i32
    return %c0_i32, %c0_i32_0 : i32, i32
  }
  func.func @transform_5(%arg0: i32, %arg1: i32) -> (i32, i32) {
    %c0_i32 = arith.constant 0 : i32
    %c0_i32_0 = arith.constant 0 : i32
    %c0_i32_1 = arith.constant 0 : i32
    return %c0_i32, %c0_i32_0 : i32, i32
  }
  func.func @transform_6(%arg0: i32, %arg1: i32) -> (i32, i32) {
    %c0_i32 = arith.constant 0 : i32
    %c0_i32_0 = arith.constant 0 : i32
    %c0_i32_1 = arith.constant 0 : i32
    return %c0_i32, %c0_i32_0 : i32, i32
  }
  func.func @transform_7(%arg0: i32, %arg1: i32) -> (i32, i32, i32) {
    %c0_i32 = arith.constant 0 : i32
    %c0_i32_0 = arith.constant 0 : i32
    %c0_i32_1 = arith.constant 0 : i32
    return %arg0, %c0_i32, %c0_i32_0 : i32, i32, i32
  }
}

module attributes {stable_mosaic.version = 11 : i64} {
  func.func @_class_attention_kernel(%arg0: i32, %arg1: i32, %arg2: memref<1x1x32xf32, #tpu.memory_space<vmem>>, %arg3: memref<1x8x32xf32, #tpu.memory_space<vmem>>, %arg4: memref<32x32xf32, #tpu.memory_space<vmem>>, %arg5: memref<8x32xf32, #tpu.memory_space<vmem>>, %arg6: memref<32x32xf32, #tpu.memory_space<vmem>>, %arg7: memref<32x32xf32, #tpu.memory_space<vmem>>, %arg8: memref<1x32xf32, #tpu.memory_space<vmem>>, %arg9: memref<1x1x32xf32, #tpu.memory_space<vmem>>, %arg10: memref<8x1xf32, #tpu.memory_space<vmem>>, %arg11: memref<8x1xf32, #tpu.memory_space<vmem>>, %arg12: memref<8x32xf32, #tpu.memory_space<vmem>>) attributes {dimension_semantics = [#tpu.dimension_semantics<parallel>, #tpu.dimension_semantics<arbitrary>], iteration_bounds = array<i64: 2, 1>, scalar_prefetch = 0 : i64, scratch_operands = 3 : i64, tpu.core_type = #tpu.core_type<tc>, window_params = [{transform_indices = @transform_0, window_bounds = array<i64: 1, 1, 32>}, {transform_indices = @transform_1, window_bounds = array<i64: 1, 8, 32>}, {pipeline_mode = #tpu.pipeline_mode<synchronous>, transform_indices = @transform_2, window_bounds = array<i64: 32, 32>}, {pipeline_mode = #tpu.pipeline_mode<synchronous>, transform_indices = @transform_3, window_bounds = array<i64: 8, 32>}, {pipeline_mode = #tpu.pipeline_mode<synchronous>, transform_indices = @transform_4, window_bounds = array<i64: 32, 32>}, {pipeline_mode = #tpu.pipeline_mode<synchronous>, transform_indices = @transform_5, window_bounds = array<i64: 32, 32>}, {pipeline_mode = #tpu.pipeline_mode<synchronous>, transform_indices = @transform_6, window_bounds = array<i64: 1, 32>}, {transform_indices = @transform_7, window_bounds = array<i64: 1, 1, 32>}]} {
    %c0_i32 = arith.constant 0 : i32
    %0 = arith.cmpi eq, %arg1, %c0_i32 : i32
    %1 = arith.extui %0 : i1 to i32
    %c0_i32_0 = arith.constant 0 : i32
    %2 = arith.cmpi ne, %1, %c0_i32_0 : i32
    scf.if %2 {
      %cst_28 = arith.constant 0xFF800000 : f32
      %38 = vector.broadcast %cst_28 : f32 to vector<8x1xf32>
      %c0_29 = arith.constant 0 : index
      %c0_30 = arith.constant 0 : index
      %39 = vector.load %arg10[%c0_29, %c0_30] : memref<8x1xf32, #tpu.memory_space<vmem>>, vector<8x1xf32>
      tpu.vector_store %arg10[%c0_29, %c0_30], %38 {strides = array<i32>} : memref<8x1xf32, #tpu.memory_space<vmem>>, vector<8x1xf32>,
      %cst_31 = arith.constant 0.000000e+00 : f32
      %40 = vector.broadcast %cst_31 : f32 to vector<8x1xf32>
      %c0_32 = arith.constant 0 : index
      %c0_33 = arith.constant 0 : index
      %41 = vector.load %arg11[%c0_32, %c0_33] : memref<8x1xf32, #tpu.memory_space<vmem>>, vector<8x1xf32>
      tpu.vector_store %arg11[%c0_32, %c0_33], %40 {strides = array<i32>} : memref<8x1xf32, #tpu.memory_space<vmem>>, vector<8x1xf32>,
      %cst_34 = arith.constant 0.000000e+00 : f32
      %42 = vector.broadcast %cst_34 : f32 to vector<8x32xf32>
      %c0_35 = arith.constant 0 : index
      %c0_36 = arith.constant 0 : index
      %43 = vector.load %arg12[%c0_35, %c0_36] : memref<8x32xf32, #tpu.memory_space<vmem>>, vector<8x32xf32>
      tpu.vector_store %arg12[%c0_35, %c0_36], %42 {strides = array<i32>} : memref<8x32xf32, #tpu.memory_space<vmem>>, vector<8x32xf32>,
    } else {
    }
    %c0 = arith.constant 0 : index
    %c0_1 = arith.constant 0 : index
    %c0_2 = arith.constant 0 : index
    %3 = vector.load %arg3[%c0, %c0_1, %c0_2] : memref<1x8x32xf32, #tpu.memory_space<vmem>>, vector<1x8x32xf32>
    %4 = vector.shape_cast %3 : vector<1x8x32xf32> to vector<8x32xf32>
    %c0_3 = arith.constant 0 : index
    %c0_4 = arith.constant 0 : index
    %5 = vector.load %arg4[%c0_3, %c0_4] : memref<32x32xf32, #tpu.memory_space<vmem>>, vector<32x32xf32>
    %cst = arith.constant dense<0.000000e+00> : vector<8x32xf32>
    %6 = tpu.matmul %4, %5, %cst {dimension_numbers = #tpu.dot_dimension_numbers<[1], [0], [0], [1], [0, 0, 1, 1], [], []>} : vector<8x32xf32>, vector<32x32xf32>, vector<8x32xf32> -> vector<8x32xf32>
    %c0_5 = arith.constant 0 : index
    %c0_6 = arith.constant 0 : index
    %c0_7 = arith.constant 0 : index
    %7 = vector.load %arg2[%c0_5, %c0_6, %c0_7] : memref<1x1x32xf32, #tpu.memory_space<vmem>>, vector<1x1x32xf32>
    %8 = vector.shape_cast %7 : vector<1x1x32xf32> to vector<1x32xf32>
    %9 = vector.broadcast %8 : vector<1x32xf32> to vector<8x32xf32>
    %10 = arith.mulf %6, %9 : vector<8x32xf32>
    %c0_8 = arith.constant 0 : index
    %c0_9 = arith.constant 0 : index
    %11 = vector.load %arg5[%c0_8, %c0_9] : memref<8x32xf32, #tpu.memory_space<vmem>>, vector<8x32xf32>
    %cst_10 = arith.constant dense<0.000000e+00> : vector<8x8xf32>
    %12 = tpu.matmul %11, %10, %cst_10 {dimension_numbers = #tpu.dot_dimension_numbers<[1], [1], [0], [0], [0, 0, 1, 0], [], []>} : vector<8x32xf32>, vector<8x32xf32>, vector<8x8xf32> -> vector<8x8xf32>
    %c0_11 = arith.constant 0 : index
    %c0_12 = arith.constant 0 : index
    %13 = vector.load %arg10[%c0_11, %c0_12] : memref<8x1xf32, #tpu.memory_space<vmem>>, vector<8x1xf32>
    %cst_13 = arith.constant dense<0xFF800000> : vector<8xf32>
    %14 = vector.multi_reduction <maximumf>, %12, %cst_13 [1] : vector<8x8xf32> to vector<8xf32>
    %15 = vector.shape_cast %14 : vector<8xf32> to vector<8x1xf32>
    %16 = arith.maximumf %13, %15 : vector<8x1xf32>
    %17 = arith.subf %13, %16 : vector<8x1xf32>
    %18 = math.exp %17 : vector<8x1xf32>
    %19 = vector.broadcast %16 : vector<8x1xf32> to vector<8x8xf32>
    %20 = arith.subf %12, %19 : vector<8x8xf32>
    %21 = math.exp %20 : vector<8x8xf32>
    %c0_14 = arith.constant 0 : index
    %c0_15 = arith.constant 0 : index
    %22 = vector.load %arg11[%c0_14, %c0_15] : memref<8x1xf32, #tpu.memory_space<vmem>>, vector<8x1xf32>
    %23 = arith.mulf %18, %22 : vector<8x1xf32>
    %cst_16 = arith.constant dense<0.000000e+00> : vector<8xf32>
    %24 = vector.multi_reduction <add>, %21, %cst_16 [1] : vector<8x8xf32> to vector<8xf32>
    %25 = vector.shape_cast %24 : vector<8xf32> to vector<8x1xf32>
    %26 = arith.addf %23, %25 : vector<8x1xf32>
    %c0_17 = arith.constant 0 : index
    %c0_18 = arith.constant 0 : index
    %27 = vector.load %arg11[%c0_17, %c0_18] : memref<8x1xf32, #tpu.memory_space<vmem>>, vector<8x1xf32>
    tpu.vector_store %arg11[%c0_17, %c0_18], %26 {strides = array<i32>} : memref<8x1xf32, #tpu.memory_space<vmem>>, vector<8x1xf32>,
    %c0_19 = arith.constant 0 : index
    %c0_20 = arith.constant 0 : index
    %28 = vector.load %arg10[%c0_19, %c0_20] : memref<8x1xf32, #tpu.memory_space<vmem>>, vector<8x1xf32>
    tpu.vector_store %arg10[%c0_19, %c0_20], %16 {strides = array<i32>} : memref<8x1xf32, #tpu.memory_space<vmem>>, vector<8x1xf32>,
    %c0_21 = arith.constant 0 : index
    %c0_22 = arith.constant 0 : index
    %29 = vector.load %arg12[%c0_21, %c0_22] : memref<8x32xf32, #tpu.memory_space<vmem>>, vector<8x32xf32>
    %30 = vector.broadcast %18 : vector<8x1xf32> to vector<8x32xf32>
    %31 = arith.mulf %30, %29 : vector<8x32xf32>
    %cst_23 = arith.constant dense<0.000000e+00> : vector<8x32xf32>
    %32 = tpu.matmul %21, %4, %cst_23 {dimension_numbers = #tpu.dot_dimension_numbers<[1], [0], [0], [1], [0, 0, 1, 1], [], []>} : vector<8x8xf32>, vector<8x32xf32>, vector<8x32xf32> -> vector<8x32xf32>
    %33 = arith.addf %31, %32 : vector<8x32xf32>
    %c0_24 = arith.constant 0 : index
    %c0_25 = arith.constant 0 : index
    %34 = vector.load %arg12[%c0_24, %c0_25] : memref<8x32xf32, #tpu.memory_space<vmem>>, vector<8x32xf32>
    tpu.vector_store %arg12[%c0_24, %c0_25], %33 {strides = array<i32>} : memref<8x32xf32, #tpu.memory_space<vmem>>, vector<8x32xf32>,
    %c0_i32_26 = arith.constant 0 : i32
    %35 = arith.cmpi eq, %arg1, %c0_i32_26 : i32
    %36 = arith.extui %35 : i1 to i32
    %c0_i32_27 = arith.constant 0 : i32
    %37 = arith.cmpi ne, %36, %c0_i32_27 : i32
    scf.if %37 {
      %c0_28 = arith.constant 0 : index
      %c0_29 = arith.constant 0 : index
      %38 = vector.load %arg11[%c0_28, %c0_29] : memref<8x1xf32, #tpu.memory_space<vmem>>, vector<8x1xf32>
      %39 = tpu.reciprocal %38 : vector<8x1xf32> -> vector<8x1xf32>
      %c0_30 = arith.constant 0 : index
      %c0_31 = arith.constant 0 : index
      %40 = vector.load %arg12[%c0_30, %c0_31] : memref<8x32xf32, #tpu.memory_space<vmem>>, vector<8x32xf32>
      %41 = vector.broadcast %39 : vector<8x1xf32> to vector<8x32xf32>
      %42 = arith.mulf %40, %41 : vector<8x32xf32>
      %c0_32 = arith.constant 0 : index
      %c0_33 = arith.constant 0 : index
      %43 = vector.load %arg6[%c0_32, %c0_33] : memref<32x32xf32, #tpu.memory_space<vmem>>, vector<32x32xf32>
      %cst_34 = arith.constant dense<0.000000e+00> : vector<8x32xf32>
      %44 = tpu.matmul %42, %43, %cst_34 {dimension_numbers = #tpu.dot_dimension_numbers<[1], [0], [0], [1], [0, 0, 1, 1], [], []>} : vector<8x32xf32>, vector<32x32xf32>, vector<8x32xf32> -> vector<8x32xf32>
      %c0_35 = arith.constant 0 : index
      %c0_36 = arith.constant 0 : index
      %45 = vector.load %arg5[%c0_35, %c0_36] : memref<8x32xf32, #tpu.memory_space<vmem>>, vector<8x32xf32>
      %46 = arith.mulf %45, %44 : vector<8x32xf32>
      %cst_37 = arith.constant dense<0.000000e+00> : vector<32xf32>
      %47 = vector.multi_reduction <add>, %46, %cst_37 [0] : vector<8x32xf32> to vector<32xf32>
      %48 = vector.shape_cast %47 : vector<32xf32> to vector<1x32xf32>
      %c0_38 = arith.constant 0 : index
      %c0_39 = arith.constant 0 : index
      %49 = vector.load %arg7[%c0_38, %c0_39] : memref<32x32xf32, #tpu.memory_space<vmem>>, vector<32x32xf32>
      %cst_40 = arith.constant dense<0.000000e+00> : vector<1x32xf32>
      %50 = tpu.matmul %48, %49, %cst_40 {dimension_numbers = #tpu.dot_dimension_numbers<[1], [0], [0], [1], [0, 0, 1, 1], [], []>} : vector<1x32xf32>, vector<32x32xf32>, vector<1x32xf32> -> vector<1x32xf32>
      %c0_41 = arith.constant 0 : index
      %c0_42 = arith.constant 0 : index
      %51 = vector.load %arg8[%c0_41, %c0_42] : memref<1x32xf32, #tpu.memory_space<vmem>>, vector<1x32xf32>
      %52 = arith.addf %50, %51 : vector<1x32xf32>
      %c0_43 = arith.constant 0 : index
      %c0_44 = arith.constant 0 : index
      %c0_45 = arith.constant 0 : index
      %53 = vector.load %arg9[%c0_43, %c0_44, %c0_45] : memref<1x1x32xf32, #tpu.memory_space<vmem>>, vector<1x1x32xf32>
      %54 = vector.shape_cast %53 : vector<1x1x32xf32> to vector<1x32xf32>
      %55 = vector.shape_cast %52 : vector<1x32xf32> to vector<1x1x32xf32>
      tpu.vector_store %arg9[%c0_43, %c0_44, %c0_45], %55 {strides = array<i32>} : memref<1x1x32xf32, #tpu.memory_space<vmem>>, vector<1x1x32xf32>,
    } else {
    }
    return
  }
  func.func @transform_0(%arg0: i32, %arg1: i32) -> (i32, i32, i32) {
    %c0_i32 = arith.constant 0 : i32
    %c0_i32_0 = arith.constant 0 : i32
    %c0_i32_1 = arith.constant 0 : i32
    return %arg0, %c0_i32, %c0_i32_0 : i32, i32, i32
  }
  func.func @transform_1(%arg0: i32, %arg1: i32) -> (i32, i32, i32) {
    %c0_i32 = arith.constant 0 : i32
    %c0_i32_0 = arith.constant 0 : i32
    return %arg0, %arg1, %c0_i32 : i32, i32, i32
  }
  func.func @transform_2(%arg0: i32, %arg1: i32) -> (i32, i32) {
    %c0_i32 = arith.constant 0 : i32
    %c0_i32_0 = arith.constant 0 : i32
    %c0_i32_1 = arith.constant 0 : i32
    return %c0_i32, %c0_i32_0 : i32, i32
  }
  func.func @transform_3(%arg0: i32, %arg1: i32) -> (i32, i32) {
    %c0_i32 = arith.constant 0 : i32
    %c0_i32_0 = arith.constant 0 : i32
    %c0_i32_1 = arith.constant 0 : i32
    return %c0_i32, %c0_i32_0 : i32, i32
  }
  func.func @transform_4(%arg0: i32, %arg1: i32) -> (i32, i32) {
    %c0_i32 = arith.constant 0 : i32
    %c0_i32_0 = arith.constant 0 : i32
    %c0_i32_1 = arith.constant 0 : i32
    return %c0_i32, %c0_i32_0 : i32, i32
  }
  func.func @transform_5(%arg0: i32, %arg1: i32) -> (i32, i32) {
    %c0_i32 = arith.constant 0 : i32
    %c0_i32_0 = arith.constant 0 : i32
    %c0_i32_1 = arith.constant 0 : i32
    return %c0_i32, %c0_i32_0 : i32, i32
  }
  func.func @transform_6(%arg0: i32, %arg1: i32) -> (i32, i32) {
    %c0_i32 = arith.constant 0 : i32
    %c0_i32_0 = arith.constant 0 : i32
    %c0_i32_1 = arith.constant 0 : i32
    return %c0_i32, %c0_i32_0 : i32, i32
  }
  func.func @transform_7(%arg0: i32, %arg1: i32) -> (i32, i32, i32) {
    %c0_i32 = arith.constant 0 : i32
    %c0_i32_0 = arith.constant 0 : i32
    %c0_i32_1 = arith.constant 0 : i32
    return %arg0, %c0_i32, %c0_i32_0 : i32, i32, i32
  }
}

</mosaic_0001>

<bundles_post_ra>
// kernel: tpu_custom_call.1
= control target key start
LH: loop header
LB: loop body
LE: loop exit
PB: predicated region body
PF: predicated region fallthrough
CT: control target
= control target key end

     0   :  { %s1849_s0 = inlined_call_operand.hbm [shape: f32[2,1,32], index: 0, kind: input, shape index: {}]   ;;  %s1850_s1 = inlined_call_operand.hbm [shape: f32[2,8,32], index: 1, kind: input, shape index: {}]   ;;  %s1851_s2 = inlined_call_operand.hbm [shape: f32[32,32], index: 2, kind: input, shape index: {}]   ;;  %s1852_s3 = inlined_call_operand.vmem [shape: f32[8,32], index: 3, kind: input, shape index: {}]   ;;  %s1853_s4 = inlined_call_operand.hbm [shape: f32[32,32], index: 4, kind: input, shape index: {}]   ;;  %s1854_s5 = inlined_call_operand.hbm [shape: f32[32,32], index: 5, kind: input, shape index: {}]   ;;  %s1855_s6 = inlined_call_operand.vmem [shape: f32[1,32], index: 6, kind: input, shape index: {}]   ;;  %s1856_s7 = inlined_call_operand.hbm [shape: f32[2,1,32], index: 7, kind: output, shape index: {}]  }
   0x1   :  { %1864 = sst [smem:[#allocation22_spill]] %s1849_s0 }
   0x2   :  { %1865 = sst [smem:[#allocation23_spill]] %s1851_s2 }
   0x3   :  { %1866 = sst [smem:[#allocation24_spill]] %s1856_s7 }
   0x4   :  { %12 = vsyncpa [#allocation6], 0 }
   0x5   :  { %14 = vsyncpa [#allocation6 + $0x1], 0 }
   0x6   :  { %15 = vsyncpa [#allocation9], 0 }
   0x7   :  { %17 = vsyncpa [#allocation9 + $0x1], 0 }
   0x8   :  { %18 = vsyncpa [#allocation12], 0 }
   0x9   :  { %19 = vsyncpa [#allocation7], 0 }
   0xa   :  { %21 = vsyncpa [#allocation7 + $0x1], 0  ;;  %s1491_s24 = smov 0   ;;  %s1493_s25 = smov 0  }
   0xb   :  { %s1495_s26 = smov 0   ;;  %s1497_s27 = smov 0  }
   0xc   :  { %s1499_s28 = smov 0   ;;  %s1501_s29 = smov 0  }
   0xd LB: > { %1867 = sst [smem:[#allocation20_spill]] %s1416_s24  ;;  %s1522_s30 = sadd.s32 4294967295, %s1436_s29   ;;  %s1436_s29 = sphi %s1501_s29, %s27_s29   ;;  %s1432_s28 = sphi %s1499_s28, %s1896_s28   ;;  %s1428_s27 = sphi %s1497_s27, %s1895_s27   ;;  %s1424_s26 = sphi %s1495_s26, %s1894_s26   ;;  %s1420_s25 = sphi %s1493_s25, %s1893_s25   ;;  %s1416_s24 = sphi %s1491_s24, %s1892_s24  }
   0xe   : > { %s981_s8 = sadd.s32 4294967294, %s1436_s29   ;;  %p59_p0 = scmp.ne.s32.totalorder %s1420_s25, %s1416_s24 }
   0xf   : > { %p1857_p1 = scmp.eq.s32.totalorder %s1522_s30, 0  ;;  %p222_p3 = scmp.eq.s32.totalorder %s981_s8, 1 }
  0x10   : > { %p982_p5 = scmp.ge.s32.totalorder %s1436_s29, 1  ;;  %p229_p7 = scmp.lt.s32.totalorder %s1436_s29, 3 }
  0x11   : > { %p1531_p4 = por %p1857_p1, %p59_p0  ;;  %p1536_p6 = por %p222_p3, %p59_p0 }
  0x12   : > { %p1541_p8 = pnand %p982_p5, %p229_p7  ;;  %s1438_s12 = smov [#allocation10]  }
  0x13   : > { %s1868_s9 = scalar_select %p1531_p4, 1, 0 }
  0x14   : > { %s1869_s10 = scalar_select %p1536_p6, 1, 0 }
  0x15   : > { %s1871_s11 = scalar_select %p1541_p8, 1, 0 }
  0x16   : > { %1870 = sst [smem:[#allocation21_spill]] %s1869_s10  ;;  %s241_s13 = sshll.u32 %s1438_s12, 4  ;;  %s1545_s13 = int_to_ptr.vmem [resolvable:$true] %s241_s13 }
  0x17   : > { %p1103_p9 = pneg %p1541_p8  ;;  %s1439_s15 = smov [#allocation11]  }
  0x18   : > { %s257_s16 = sshll.u32 %s1439_s15, 4  ;;  %s1440_s17 = smov [#allocation13]   ;;  %s1556_s16 = int_to_ptr.vmem [resolvable:$true] %s257_s16 }
  0x19   : > { %p1552_p11 = pnand %p1103_p9, %p1857_p1  ;;  %s1558_s18 = sshll.u32 %s1440_s17, 4  ;;  %s271_s18 = int_to_ptr.vmem [resolvable:$true] %s1558_s18 }
  0x1a   : > { %s1873_s2 = sld [smem:[#allocation23_spill]] }
  0x1b   : > { %p1568_p13 = pneg %p1552_p11 }
  0x20   : > { %s1198_s21 = scalar_lea.hbm %s1873_s2, 512 }
  0x21   : > { %p1199_p12 = scmp.ne.s32.totalorder %s1873_s2, %s1198_s21  ;;  %p1205_p5 = scmp.lt.u32.totalorder %s1198_s21, %s1873_s2 }
  0x23   : > { %p1201_p0 = pnand %p1568_p13, %p1199_p12 }
  0x25   : > { %p1202_p3 = pneg %p1201_p0 }
  0x27   : > { %p1207_p7 = pnand %p1205_p5, %p1202_p3 }
  0x29   : > { %1210 = shalt.err (!%p1207_p7)
}
  0x2a   : > { %s1211_s17 = scalar_lea.vmem %s1545_s13, 512  ;;  %p1219_p2 = scmp.lt.s32.totalorder %s1545_s13, %s1545_s13 }
  0x2b   : > { %p1212_p9 = scmp.ne.s32.totalorder %s1545_s13, %s1211_s17  ;;  %p1220_p6 = scmp.lt.s32.totalorder %s1211_s17, %s1211_s17 }
  0x2d   : > { %p1214_p10 = pnand %p1212_p9, %p1568_p13  ;;  %p1221_p12 = por %p1220_p6, %p1219_p2 }
  0x2f   : > { %p1215_p1 = pneg %p1214_p10 }
  0x31   : > { %p1222_p0 = pnand %p1221_p12, %p1215_p1 }
  0x33   : > { %1225 = shalt.err (!%p1222_p0)
}
  0x34   : > { %s1441_s19 = smov 128   ;;  %s1442_s20 = smov 8  }
  0x35   : > { %1106 = dma.hbm_to_vmem [thread:$0]  (!%p1552_p11), %s1873_s2, 512, %s1545_s13, [#allocation9], %s1441_s19, %s1441_s19, %s1442_s20  }
  0x36   : > { %s1226_s15 = scalar_lea.hbm %s1853_s4, 512 }
  0x37   : > { %p1227_p1 = scmp.ne.s32.totalorder %s1853_s4, %s1226_s15  ;;  %p1233_p10 = scmp.lt.u32.totalorder %s1226_s15, %s1853_s4 }
  0x39   : > { %p1229_p2 = pnand %p1227_p1, %p1568_p13 }
  0x3b   : > { %p1230_p6 = pneg %p1229_p2 }
  0x3d   : > { %p1235_p3 = pnand %p1233_p10, %p1230_p6 }
  0x3f   : > { %1238 = shalt.err (!%p1235_p3)
}
  0x40   : > { %s1239_s13 = scalar_lea.vmem %s1556_s16, 512  ;;  %p1247_p12 = scmp.lt.s32.totalorder %s1556_s16, %s1556_s16 }
  0x41   : > { %p1240_p5 = scmp.ne.s32.totalorder %s1556_s16, %s1239_s13  ;;  %p1248_p0 = scmp.lt.s32.totalorder %s1239_s13, %s1239_s13 }
  0x43   : > { %p1242_p7 = pnand %p1240_p5, %p1568_p13  ;;  %p1249_p1 = por %p1248_p0, %p1247_p12 }
  0x45   : > { %p1243_p9 = pneg %p1242_p7 }
  0x47   : > { %p1250_p2 = pnand %p1249_p1, %p1243_p9 }
  0x49   : > { %1253 = shalt.err (!%p1250_p2)
}
  0x4a   : > { %1109 = dma.hbm_to_vmem [thread:$0]  (!%p1552_p11), %s1853_s4, 512, %s1556_s16, [#allocation12], %s1441_s19, %s1441_s19, %s1442_s20  }
  0x4b   : > { %s1254_s22 = scalar_lea.hbm %s1854_s5, 512 }
  0x4c   : > { %p1255_p6 = scmp.ne.s32.totalorder %s1854_s5, %s1254_s22  ;;  %p1261_p5 = scmp.lt.u32.totalorder %s1254_s22, %s1854_s5 }
  0x4e   : > { %p1257_p10 = pnand %p1255_p6, %p1568_p13 }
  0x50   : > { %p1258_p3 = pneg %p1257_p10 }
  0x52   : > { %p1263_p7 = pnand %p1261_p5, %p1258_p3 }
  0x54   : > { %1266 = shalt.err (!%p1263_p7)
}
  0x55   : > { %s1267_s13 = scalar_lea.vmem %s271_s18, 512  ;;  %p1275_p1 = scmp.lt.s32.totalorder %s271_s18, %s271_s18 }
  0x56   : > { %p1268_p9 = scmp.ne.s32.totalorder %s271_s18, %s1267_s13  ;;  %p1276_p2 = scmp.lt.s32.totalorder %s1267_s13, %s1267_s13 }
  0x58   : > { %p1270_p12 = pnand %p1268_p9, %p1568_p13  ;;  %p1277_p4 = por %p1276_p2, %p1275_p1 }
  0x5a   : > { %p1271_p0 = pneg %p1270_p12 }
  0x5c   : > { %p1278_p8 = pnand %p1277_p4, %p1271_p0 }
  0x5e   : > { %1281 = shalt.err (!%p1278_p8)
}
  0x5f   : > { %1112 = dma.hbm_to_vmem [thread:$0]  (!%p1552_p11), %s1854_s5, 512, %s271_s18, [#allocation12], %s1441_s19, %s1441_s19, %s1442_s20  }
  0x60   : > { %s46_s8 = sadd.s32 1, %s1424_s26  ;;  %s39_s14 = sadd.s32 1, %s1432_s28 }
  0x61   : > { %p53_p4 = scmp.ne.s32.totalorder %s1424_s26, %s1420_s25  ;;  %p41_p8 = scmp.ge.s32.totalorder %s39_s14, 2 }
  0x62   : > { %p54_p13 = scmp.eq.s32.totalorder %s1436_s29, 0  ;;  %p1875_p6 = scmp.eq.s32.totalorder %s1522_s30, 1 }
  0x63   : > { %p1127_p3 = scmp.lt.s32.totalorder %s1436_s29, 2  ;;  %s1898_s14 = smov (%p41_p8, %s39_s14), 0 }
  0x64   : > { %p1647_p10 = por %p1875_p6, %p53_p4  ;;  %p55_p5 = por %p54_p13, %p53_p4 }
  0x65   : > { %s1655_s10 = sand.u32 1, %s1424_s26   ;;  %s43_s18 = ssub.s32 %s1432_s28, %s1898_s14 }
  0x66   : > { %s1876_s24 = scalar_select %p1647_p10, 1, 0 }
  0x67   : > { %p44_p11 = scmp.eq.s32.totalorder %s43_s18, 0  ;;  %s987_s19 = sshll.u32 %s1432_s28, 4 }
  0x68   : > { %s290_s20 = scalar_lea.vmem [#allocation5], %s1655_s10  ;;  %s1877_s0 = sld [smem:[#allocation22_spill]] }
  0x69   : > { %s297_s21 = sshll.u32 %s290_s20, 4  ;;  %p1671_p7 = pnand %p1127_p3, %p55_p5  ;;  %s1669_s21 = int_to_ptr.vmem [resolvable:$true] %s297_s21 }
  0x6a   : > { %s1662_s22 = scalar_select %p44_p11, %s1424_s26, %s46_s8  }
  0x6b   : > { %s988_s16 = sshll.u32 %s1655_s10, 3  ;;  %s288_s7 = scalar_lea.sflag [#allocation6], %s1655_s10 }
  0x6c   : > { %p1284_p12 = pneg %p1671_p7 }
  0x6e   : > { %s1667_s15 = scalar_lea.hbm %s1877_s0, %s987_s19  ;;  %s1287_s20 = scalar_lea.hbm %s1877_s0, 32 }
  0x6f   : > { %s1282_s8 = scalar_lea.hbm %s1667_s15, 16  ;;  %p1288_p2 = scmp.lt.u32.totalorder %s1667_s15, %s1877_s0 }
  0x70   : > { %p1283_p9 = scmp.ne.s32.totalorder %s1667_s15, %s1282_s8  ;;  %p1289_p4 = scmp.lt.u32.totalorder %s1287_s20, %s1282_s8 }
  0x71   : > { %p1291_p13 = scmp.lt.u32.totalorder %s1282_s8, %s1667_s15 }
  0x72   : > { %p1285_p0 = pnand %p1284_p12, %p1283_p9  ;;  %p1290_p8 = por %p1289_p4, %p1288_p2 }
  0x74   : > { %p1286_p1 = pneg %p1285_p0  ;;  %p1292_p6 = por %p1291_p13, %p1290_p8 }
  0x76   : > { %p1293_p3 = pnand %p1292_p6, %p1286_p1 }
  0x78   : > { %1296 = shalt.err (!%p1293_p3)
}
  0x79   : > { %s1297_s13 = scalar_lea.vmem %s1669_s21, 16  ;;  %s1443_s18 = smov [#allocation5]  }
  0x7a   : > { %p1298_p5 = scmp.ne.s32.totalorder %s1669_s21, %s1297_s13  ;;  %s1302_s19 = sshll.u32 %s1443_s18, 4  ;;  %s1303_s19 = int_to_ptr.vmem [resolvable:$false] %s1302_s19 }
  0x7b   : > { %s1304_s23 = scalar_lea.vmem %s1303_s19, 32  ;;  %p1305_p0 = scmp.lt.s32.totalorder %s1669_s21, %s1303_s19 }
  0x7c   : > { %p1300_p11 = pnand %p1298_p5, %p1284_p12  ;;  %p1306_p2 = scmp.lt.s32.totalorder %s1304_s23, %s1297_s13 }
  0x7e   : > { %p1301_p9 = pneg %p1300_p11  ;;  %p1307_p4 = por %p1306_p2, %p1305_p0 }
  0x80   : > { %p1308_p8 = pnand %p1307_p4, %p1301_p9 }
  0x82   : > { %1311 = shalt.err (!%p1308_p8)
}
  0x83   : > { %1116 = dma.hbm_to_vmem [thread:$0]  (!%p1671_p7), %s1667_s15, 16, %s1669_s21, %s288_s7  }
  0x84   : > { %s989_s8 = sshll.u32 %s1432_s28, 7  ;;  %s308_s20 = scalar_lea.vmem [#allocation8], %s988_s16 }
  0x85   : > { %s316_s12 = sshll.u32 %s308_s20, 4  ;;  %s1709_s13 = scalar_lea.hbm %s1850_s1, %s989_s8  ;;  %s317_s12 = int_to_ptr.vmem [resolvable:$true] %s316_s12 }
  0x86   : > { %s1879_s19 = sand.u32 1, %s1436_s29   ;;  %s1312_s2 = scalar_lea.hbm %s1709_s13, 128 }
  0x87   : > { %s305_s23 = scalar_lea.sflag [#allocation9], %s1879_s19  ;;  %p1313_p1 = scmp.ne.s32.totalorder %s1709_s13, %s1312_s2 }
  0x88   : > { %s1317_s15 = scalar_lea.hbm %s1850_s1, 256  ;;  %p1318_p3 = scmp.lt.u32.totalorder %s1709_s13, %s1850_s1 }
  0x89   : > { %p1315_p13 = pnand %p1313_p1, %p1284_p12  ;;  %p1319_p5 = scmp.lt.u32.totalorder %s1317_s15, %s1312_s2 }
  0x8a   : > { %p1321_p9 = scmp.lt.u32.totalorder %s1312_s2, %s1709_s13 }
  0x8b   : > { %p1316_p6 = pneg %p1315_p13  ;;  %p1320_p11 = por %p1319_p5, %p1318_p3 }
  0x8d   : > { %p1322_p0 = por %p1321_p9, %p1320_p11 }
  0x8f   : > { %p1323_p2 = pnand %p1322_p0, %p1316_p6 }
  0x91   : > { %1326 = shalt.err (!%p1323_p2)
}
  0x92   : > { %s1327_s7 = scalar_lea.vmem %s317_s12, 128  ;;  %s1444_s8 = smov [#allocation8]  }
  0x93   : > { %p1328_p4 = scmp.ne.s32.totalorder %s317_s12, %s1327_s7  ;;  %s1332_s20 = sshll.u32 %s1444_s8, 4  ;;  %s1333_s20 = int_to_ptr.vmem [resolvable:$false] %s1332_s20 }
  0x94   : > { %s1334_s18 = scalar_lea.vmem %s1333_s20, 256  ;;  %p1335_p13 = scmp.lt.s32.totalorder %s317_s12, %s1333_s20 }
  0x95   : > { %p1330_p8 = pnand %p1328_p4, %p1284_p12  ;;  %p1336_p10 = scmp.lt.s32.totalorder %s1334_s18, %s1327_s7 }
  0x97   : > { %p1331_p1 = pneg %p1330_p8  ;;  %p1337_p3 = por %p1336_p10, %p1335_p13 }
  0x99   : > { %p1338_p5 = pnand %p1337_p3, %p1331_p1 }
  0x9b   : > { %1341 = shalt.err (!%p1338_p5)
}
  0x9c   : > { %1119 = dma.hbm_to_vmem [thread:$0]  (!%p1671_p7), %s1709_s13, 128, %s317_s12, %s305_s23  }
  0x9d   : > { %p1880_p6 = scmp.ne.s32.totalorder %s1871_s11, 0 }
  0x9e   : > { %s1735_s2 = sand.u32 (!%p1880_p6), 1, %s1420_s25   ;;  %p1881_p12 = scmp.ne.s32.totalorder (!%p1880_p6), %s1868_s9, 0 }
  0x9f   : > { %325 = sbr.rel (%p1880_p6) target bundleno = 1654 (0x676), region = 48  ;;  %s328_s19 = scalar_lea.sflag (!%p1880_p6), [#allocation6], %s1735_s2 }
  0xa0   : > { %s330_s10 = scalar_lea.vmem (!%p1880_p6), [#allocation5], %s1735_s2 }
  0xa6   : > { %1395 = dma.done.wait (%p1881_p12), %s328_s19, 16  }
  0xa7   : > { %1397 = vsyncadd (%p1881_p12), %s328_s19, 4294967280  ;;  %s335_s17 = sand.u32 1, %s1522_s30   ;;  %s991_s12 = sshll.u32 %s1735_s2, 3 }
  0xa8   : > { %s336_s11 = scalar_lea.sflag [#allocation9], %s335_s17  ;;  %s339_s13 = scalar_lea.vmem [#allocation8], %s991_s12 }
  0xa9   : > { %1399 = dma.done.wait (%p1881_p12), %s336_s11, 128  }
  0xaa   : > { %1401 = vsyncadd (%p1881_p12), %s336_s11, 4294967168  ;;  %p1882_p10 = scmp.eq.s32.totalorder %s1522_s30, 0 }
  0xac   : > { %1403 = dma.done.wait (%p1882_p10), [#allocation9], 512   ;;  %p1883_p7 = pmov %p1882_p10 }
  0xae   : > { %1405 = vsyncadd (%p1883_p7), [#allocation9], 4294966784  ;;  %p1884_p11 = pmov %p1883_p7 }
  0xaf   : > { %p1885_p9 = pmov %p1883_p7 }
  0xb0   : > { %1407 = dma.done.wait (%p1884_p11), [#allocation12], 1024  }
  0xb1   : > { %1409 = vsyncadd (%p1885_p9), [#allocation12], 4294966272  ;;  %vm392_vm0 = vcmask 261120   ;;  %v1445_v0 = vmov 0.0|0.0   ;;  %vm1446_vm1 = vmmov 0   ;;  %v1447_v1 = vmov 0.0  }
  0xb2   : > { %1067 = vmatprep.subr.bf16.mxu0 %v1445_v0  ;;  %1032 = vmatprep.mubr.msk.f32.mxu0 %vm1446_vm1, %v1447_v1  ;;  %393 = vst.msk [vmem:[#allocation4] sm:$0xff] %vm392_vm0, %v1447_v1  ;;  %v395_v2 = vld [vmem:[#allocation10] sm:$0xff]  ;;  %v396_v3 = vld [vmem:[#allocation10 + $0x8] sm:$0xff]  ;;  %v397_v4 = vld [vmem:[#allocation10 + $0x10] sm:$0xff]  ;;  %vm389_vm2 = vcmask 7168   ;;  %v1448_v14 = vmov -inf  }
  0xb3   : > { %1035 = vmatprep.subr.mxu1 %v1447_v1  ;;  %1037 = vmatprep.mubr.msk.f32.mxu1 %vm1446_vm1, %v1447_v1  ;;  %v1068_v5 = vpack.c.bf16 %v396_v3, %v395_v2  ;;  %v398_v6 = vld [vmem:[#allocation10 + $0x18] sm:$0xff]  ;;  %v996_v9 = vld [vmem:[%s330_s10] ss:$0 sm:$0xff]  ;;  %390 = vst.msk [vmem:[#allocation2] sm:$0xff] %vm389_vm2, %v1448_v14  ;;  %391 = vst.msk [vmem:[#allocation3] sm:$0xff] %vm389_vm2, %v1447_v1  ;;  %vm559_vm3 = vcmask 64512  }
  0xb4   : > { %v1071_v7 = vpack.c.bf16 %v398_v6, %v397_v4  ;;  %v394_v8 = vld [vmem:[%s339_s13] sm:$0xff]  ;;  %v1449_v18 = vmov 0   ;;  %v678_v30 = vld [vmem:[#allocation11] sm:$0xff]  ;;  %v679_v31 = vld [vmem:[#allocation11 + $0x8] sm:$0xff]  ;;  %s1002_s15 = sshll.u32 %s1428_s27, 4  ;;  %s384_s0 = scalar_lea.vmem [#allocation14], %s1735_s2 }
  0xb5   : > { %1069 = vmatpush3.bf16.msra.mxu0 %v1068_v5  ;;  %v1771_v13 = vld [vmem:[%s1852_s3] sm:$0xff]  ;;  %1190 = vset.pattern.permute.xlu0 %v1449_v18  ;;  %v1074_v33 = vpack.c.bf16 %v679_v31, %v678_v30  ;;  %v681_v34 = vld [vmem:[#allocation11 + $0x18] sm:$0xff]  ;;  %v764_v51 = vld [vmem:[#allocation13] sm:$0xff]  ;;  %s857_s16 = sshll.u32 %s384_s0, 4  ;;  %vm842_vm4 = vcmask 253952   ;;  %s1886_s20 = sld [smem:[#allocation24_spill]]  ;;  %s1802_s16 = int_to_ptr.vmem [resolvable:$true] %s857_s16 }
  0xb6   : > { %1070 = vmatprep.subr.bf16.mxu0 %v1445_v0  ;;  %1191 = vset.pattern.permute.xlu1 %v1449_v18  ;;  %v680_v32 = vld [vmem:[#allocation11 + $0x10] sm:$0xff]  ;;  %v765_v52 = vld [vmem:[#allocation13 + $0x8] sm:$0xff]  ;;  %v767_v55 = vld [vmem:[#allocation13 + $0x18] sm:$0xff]  ;;  %s845_s19 = scalar_lea.sflag [#allocation7], %s1735_s2  ;;  %s1342_s10 = scalar_lea.vmem %s1802_s16, 16 }
  0xb7   : > { %v1077_v35 = vpack.c.bf16 %v681_v34, %v680_v32  ;;  %v1080_v53 = vpack.c.bf16 %v765_v52, %v764_v51  ;;  %v766_v54 = vld [vmem:[#allocation13 + $0x10] sm:$0xff]  ;;  %p1343_p0 = scmp.ne.s32.totalorder %s1802_s16, %s1342_s10  ;;  %p1887_p2 = scmp.ne.s32.totalorder %s1876_s24, 0 }
  0xb8   : > { %v1083_v56 = vpack.c.bf16 %v767_v55, %v766_v54  ;;  %s1450_s27 = smov [#allocation14]  }
  0xb9   : > { %1072 = vmatpush3.bf16.msra.mxu0 %v1071_v7  ;;  %v584_v42 = vld [vmem:[#allocation4] sm:$0xff]  ;;  %p1344_p4 = pnand %p1343_p0, %p1887_p2  ;;  %s1346_s17 = sshll.u32 %s1450_s27, 4  ;;  %s1347_s17 = int_to_ptr.vmem [resolvable:$false] %s1346_s17 }
  0xba   : > { %1073 = vmatprep.subr.bf16.mxu0 %v1445_v0  ;;  %v558_v19 = vld [vmem:[#allocation2] sm:$0xff]  ;;  %v575_v36 = vld [vmem:[#allocation3] sm:$0xff]  ;;  %s1348_s12 = scalar_lea.vmem %s1347_s17, 32  ;;  %p1349_p1 = scmp.lt.s32.totalorder %s1802_s16, %s1347_s17 }
  0xbb   : > { %s1800_s18 = scalar_lea.hbm %s1886_s20, %s1002_s15  ;;  %p1345_p8 = pneg %p1344_p4 }
  0xbc   : > { %1033 = vmatmul.mubr.msk.f32.vlgmr.msra.gmra.mrb[0].mxu0 %vm392_vm0, %v394_v8  ;;  %p1350_p13 = scmp.lt.s32.totalorder %s1348_s12, %s1342_s10 }
  0xbd   : > { %1053 = vmatprep.mubr.msk.f32.mxu0 %vm1446_vm1, %v1447_v1  ;;  %1075 = vmatpush3.bf16.msra.mxu0 %v1074_v33 }
  0xbe   : > { %1076 = vmatprep.subr.bf16.mxu0 %v1445_v0  ;;  %p1351_p3 = por %p1350_p13, %p1349_p1 }
  0xc0   : > { %p1352_p5 = pnand %p1351_p3, %p1345_p8 }
  0xc1   : > { %1078 = vmatpush3.bf16.msra.mxu0 %v1077_v35 }
 0x18f   : > { %v469_v10 = vpop.f32.mrb[0].mxu0 }
 0x190   : > { %v480_v11 = vmul.f32 %v996_v9, %v469_v10  ;;  %v1034_v12 = vpop.f32.mrb[1].mxu0 }
 0x192   : > { %1036 = vmatpush3.xpose.msk.msra.mxu1 %vm392_vm0, %v480_v11 }
 0x193   : > { %1040 = vmatprep.subr.mxu1 %v1447_v1 }
 0x195   : > { %1038 = vmatmul.mubr.msk.f32.vlgmr.msra.gmra.mrb[0].mxu1 %vm392_vm0, %v1771_v13 }
 0x196   : > { %1041 = vmatpush3.msra.mxu1 %v394_v8  ;;  %1042 = vmatprep.mubr.msk.f32.mxu1 %vm1446_vm1, %v1447_v1 }
 0x197   : > { %1079 = vmatprep.subr.bf16.mxu1 %v1445_v0 }
 0x268   : > { %v554_v15 = vpop.f32.mrb[0].mxu1 }
 0x269   : > { %v1039_v16 = vpop.f32.mrb[1].mxu1  ;;  %v560_v17 = vsel %vm559_vm3, %v554_v15, -inf }
 0x26a   : > { %561 = vmax.xlane.f32.xlu0 %v560_v17 }
 0x2f7   : > { %v562_v20 = vpop.xlane.xlu0 %561 }
 0x2f8   : > { %v563_v21 = vmax.f32 %v558_v19, %v562_v20 }
 0x2fa   : > { %v564_v22 = vsub.f32 %v558_v19, %v563_v21  ;;  %583 = vst.msk [vmem:[#allocation2] sm:$0xff] %vm389_vm2, %v563_v21  ;;  %569 = vperm.xlu0 %1190, %v563_v21  }
 0x2fc   : > { %v565_v28 = vmul.f32 1.442695, %v564_v22 }
 0x379   : > { %v570_v23 = vpop.permute.xlu0 %569 }
 0x37a   : > { %v572_v24 = vsub.f32 %v554_v15, %v570_v23 }
 0x37c   : > { %v573_v25 = vmul.f32 1.442695, %v572_v24 }
 0x37e   : > { %1192 = vpow2.f32 %v573_v25 }
 0x37f   : > { %1194 = vpow2.f32 %v565_v28 }
 0x388   : > { %v1193_v26 = vpop.eup %1192 }
 0x389   : > { %1043 = vmatmul.mubr.msk.f32.vlgmr.msra.gmra.mrb[2].mxu1 %vm559_vm3, %v1193_v26  ;;  %v577_v27 = vsel %vm559_vm3, %v1193_v26, 0.0  ;;  %v1195_v29 = vpop.eup %1194 }
 0x38a   : > { %578 = vadd.xlane.f32.xlu1 %v577_v27  ;;  %1064 = vmatprep.mubr.msk.f32.mxu1 %vm1446_vm1, %v1447_v1  ;;  %v576_v37 = vmul.f32 %v1195_v29, %v575_v36 }
 0x38b   : > { %1081 = vmatpush3.bf16.msra.mxu1 %v1080_v53 }
 0x38c   : > { %1082 = vmatprep.subr.bf16.mxu1 %v1445_v0  ;;  %v768_v0 = vld [vmem:[%s1855_s6] sm:$0x1] }
 0x38f   : > { %1084 = vmatpush3.bf16.msra.mxu1 %v1083_v56 }
 0x39b   : > { %587 = vperm.xlu1 %1191, %v1195_v29  }
 0x417   : > { %v579_v38 = vpop.xlane.xlu1 %578 }
 0x418   : > { %v580_v39 = vadd.f32 %v579_v38, %v576_v37 }
 0x41a   : > { %582 = vst.msk [vmem:[#allocation3] sm:$0xff] %vm389_vm2, %v580_v39 }
 0x41b   : > { %v588_v43 = vpop.permute.xlu1 %587 }
 0x41c   : > { %v590_v44 = vmul.f32 %v588_v43, %v584_v42 }
 0x421   : > { %v669_v40 = vld [vmem:[#allocation3] sm:$0xff] }
 0x422   : > { %1196 = vrcp.f32 %v669_v40 }
 0x42c   : > { %v1197_v41 = vpop.eup %1196 }
 0x42d   : > { %674 = vperm.xlu1 %1191, %v1197_v41  }
 0x45c   : > { %v660_v45 = vpop.f32.mrb[2].mxu1 }
 0x45d   : > { %v664_v46 = vadd.f32 %v660_v45, %v590_v44  ;;  %v1044_v47 = vpop.f32.mrb[3].mxu1 }
 0x45f   : > { %665 = vst.msk [vmem:[#allocation4] sm:$0xff] %vm392_vm0, %v664_v46 }
 0x466   : > { %v671_v48 = vld [vmem:[#allocation4] sm:$0xff] }
 0x4ac   : > { %v675_v49 = vpop.permute.xlu1 %674 }
 0x4ad   : > { %v677_v50 = vmul.f32 %v675_v49, %v671_v48 }
 0x4af   : > { %1054 = vmatmul.mubr.msk.f32.vlgmr.msra.gmra.mrb[2].mxu0 %vm392_vm0, %v677_v50 }
 0x582   : > { %v751_v57 = vpop.f32.mrb[2].mxu0 }
 0x583   : > { %v756_v58 = vmul.f32 %v751_v57, %v1771_v13  ;;  %v1055_v59 = vpop.f32.mrb[3].mxu0 }
 0x585   : > { %v757_v60 = vsel %vm392_vm0, %v756_v58, 0.0 }
 0x586   : > { %v758_v61 = vrot.slane %v757_v60, 4 }
 0x588   : > { %v759_v62 = vadd.f32 %v758_v61, %v757_v60 }
 0x58a   : > { %v760_v63 = vrot.slane %v759_v62, 2 }
 0x58c   : > { %v761_v1 = vadd.f32 %v760_v63, %v759_v62 }
 0x58e   : > { %v762_v2 = vrot.slane %v761_v1, 1 }
 0x590   : > { %v763_v3 = vadd.f32 %v762_v2, %v761_v1 }
 0x592   : > { %1065 = vmatmul.mubr.msk.f32.vlgmr.msra.gmra.mrb[4].mxu1 %vm392_vm0, %v763_v3 }
 0x665   : > { %v838_v4 = vpop.f32.mrb[4].mxu1 }
 0x666   : > { %v839_v5 = vadd.f32 %v838_v4, %v768_v0  ;;  %v1066_v6 = vpop.f32.mrb[5].mxu1 }
 0x668   : > { %843 = vst.msk [vmem:[%s384_s0] sm:$0x1] %vm842_vm4, %v839_v5 }
 0x669   : > { %1355 = shalt.err (!%p1352_p5)
}
 0x66a   : > { %s1356_s2 = scalar_lea.hbm %s1800_s18, 16  ;;  %s1360_s30 = scalar_lea.hbm %s1886_s20, 32 }
 0x66b   : > { %p1357_p6 = scmp.ne.s32.totalorder %s1800_s18, %s1356_s2  ;;  %p1361_p7 = scmp.lt.u32.totalorder %s1800_s18, %s1886_s20 }
 0x66c   : > { %p1362_p11 = scmp.lt.u32.totalorder %s1360_s30, %s1356_s2  ;;  %p1364_p0 = scmp.lt.u32.totalorder %s1356_s2, %s1800_s18 }
 0x66d   : > { %p1358_p12 = pnand %p1357_p6, %p1887_p2 }
 0x66e   : > { %p1363_p9 = por %p1362_p11, %p1361_p7 }
 0x66f   : > { %p1359_p10 = pneg %p1358_p12 }
 0x670   : > { %p1365_p4 = por %p1364_p0, %p1363_p9 }
 0x672   : > { %p1366_p8 = pnand %p1365_p4, %p1359_p10 }
 0x674   : > { %1369 = shalt.err (!%p1366_p8)
}
 0x675   : > { %1101 = dma.vmem_to_hbm [thread:$0]  (%p1887_p2), %s1802_s16, 16, %s1800_s18, %s845_s19  }
 0x676 PF: > { %s1888_s21 = sld [smem:[#allocation20_spill]]  ;;  %s1889_s15 = sld [smem:[#allocation21_spill]] }
 0x677   : > { %p1891_p13 = scmp.ge.s32.totalorder %s1436_s29, 2 }
 0x67c   : > { %s869_s0 = sand.u32 1, %s1888_s21   ;;  %p1890_p1 = scmp.ne.s32.totalorder %s1889_s15, 0 }
 0x67d   : > { %s870_s7 = scalar_lea.sflag [#allocation7], %s869_s0 }
 0x67e   : > { %p1121_p3 = pnand %p1891_p13, %p1890_p1 }
 0x680   : > { %1411 = dma.done.wait (!%p1121_p3), %s870_s7, 16  }
 0x681   : > { %1413 = vsyncadd (!%p1121_p3), %s870_s7, 4294967280  ;;  %s27_s29 = sadd.s32 1, %s1436_s29   ;;  %s1892_s24 = smov %s1420_s25 }
 0x682   : > { %p24_p5 = scmp.ge.s32.totalorder %s27_s29, 4   ;;  %s1893_s25 = smov %s1424_s26 }
 0x683   : > { %s1894_s26 = smov %s1662_s22  ;;  %s1895_s27 = smov %s1432_s28 }
 0x684   : > { %s1896_s28 = smov %s1898_s14  ;;  %26 = sbr.rel (!%p24_p5) target bundleno = 13 (0xd), region = 126 }
 0x68b   :  { %874 = vsyncpa [#allocation6], 1 }
 0x68c   :  { %876 = vsyncpa [#allocation6 + $0x1], 1 }
 0x68d   :  { %877 = vsyncpa [#allocation9], 1 }
 0x68e   :  { %879 = vsyncpa [#allocation9 + $0x1], 1 }
 0x68f   :  { %880 = vsyncpa [#allocation12], 1 }
 0x690   :  { %881 = vsyncpa [#allocation7], 1 }
 0x691   :  { %883 = vsyncpa [#allocation7 + $0x1], 1 }

// kernel: tpu_custom_call.1
= control target key start
LH: loop header
LB: loop body
LE: loop exit
PB: predicated region body
PF: predicated region fallthrough
CT: control target
= control target key end

     0   :  { %s1849_s0 = inlined_call_operand.hbm [shape: f32[2,1,32], index: 0, kind: input, shape index: {}]   ;;  %s1850_s1 = inlined_call_operand.hbm [shape: f32[2,8,32], index: 1, kind: input, shape index: {}]   ;;  %s1851_s2 = inlined_call_operand.hbm [shape: f32[32,32], index: 2, kind: input, shape index: {}]   ;;  %s1852_s3 = inlined_call_operand.vmem [shape: f32[8,32], index: 3, kind: input, shape index: {}]   ;;  %s1853_s4 = inlined_call_operand.hbm [shape: f32[32,32], index: 4, kind: input, shape index: {}]   ;;  %s1854_s5 = inlined_call_operand.hbm [shape: f32[32,32], index: 5, kind: input, shape index: {}]   ;;  %s1855_s6 = inlined_call_operand.vmem [shape: f32[1,32], index: 6, kind: input, shape index: {}]   ;;  %s1856_s7 = inlined_call_operand.hbm [shape: f32[2,1,32], index: 7, kind: output, shape index: {}]  }
   0x1   :  { %1864 = sst [smem:[#allocation22_spill]] %s1849_s0 }
   0x2   :  { %1865 = sst [smem:[#allocation23_spill]] %s1851_s2 }
   0x3   :  { %1866 = sst [smem:[#allocation24_spill]] %s1856_s7 }
   0x4   :  { %12 = vsyncpa [#allocation6], 0 }
   0x5   :  { %14 = vsyncpa [#allocation6 + $0x1], 0 }
   0x6   :  { %15 = vsyncpa [#allocation9], 0 }
   0x7   :  { %17 = vsyncpa [#allocation9 + $0x1], 0 }
   0x8   :  { %18 = vsyncpa [#allocation12], 0 }
   0x9   :  { %19 = vsyncpa [#allocation7], 0 }
   0xa   :  { %21 = vsyncpa [#allocation7 + $0x1], 0  ;;  %s1491_s24 = smov 0   ;;  %s1493_s25 = smov 0  }
   0xb   :  { %s1495_s26 = smov 0   ;;  %s1497_s27 = smov 0  }
   0xc   :  { %s1499_s28 = smov 0   ;;  %s1501_s29 = smov 0  }
   0xd LB: > { %1867 = sst [smem:[#allocation20_spill]] %s1416_s24  ;;  %s1522_s30 = sadd.s32 4294967295, %s1436_s29   ;;  %s1436_s29 = sphi %s1501_s29, %s27_s29   ;;  %s1432_s28 = sphi %s1499_s28, %s1896_s28   ;;  %s1428_s27 = sphi %s1497_s27, %s1895_s27   ;;  %s1424_s26 = sphi %s1495_s26, %s1894_s26   ;;  %s1420_s25 = sphi %s1493_s25, %s1893_s25   ;;  %s1416_s24 = sphi %s1491_s24, %s1892_s24  }
   0xe   : > { %s981_s8 = sadd.s32 4294967294, %s1436_s29   ;;  %p59_p0 = scmp.ne.s32.totalorder %s1420_s25, %s1416_s24 }
   0xf   : > { %p1857_p1 = scmp.eq.s32.totalorder %s1522_s30, 0  ;;  %p222_p3 = scmp.eq.s32.totalorder %s981_s8, 1 }
  0x10   : > { %p982_p5 = scmp.ge.s32.totalorder %s1436_s29, 1  ;;  %p229_p7 = scmp.lt.s32.totalorder %s1436_s29, 3 }
  0x11   : > { %p1531_p4 = por %p1857_p1, %p59_p0  ;;  %p1536_p6 = por %p222_p3, %p59_p0 }
  0x12   : > { %p1541_p8 = pnand %p982_p5, %p229_p7  ;;  %s1438_s12 = smov [#allocation10]  }
  0x13   : > { %s1868_s9 = scalar_select %p1531_p4, 1, 0 }
  0x14   : > { %s1869_s10 = scalar_select %p1536_p6, 1, 0 }
  0x15   : > { %s1871_s11 = scalar_select %p1541_p8, 1, 0 }
  0x16   : > { %1870 = sst [smem:[#allocation21_spill]] %s1869_s10  ;;  %s241_s13 = sshll.u32 %s1438_s12, 4  ;;  %s1545_s13 = int_to_ptr.vmem [resolvable:$true] %s241_s13 }
  0x17   : > { %p1103_p9 = pneg %p1541_p8  ;;  %s1439_s15 = smov [#allocation11]  }
  0x18   : > { %s257_s16 = sshll.u32 %s1439_s15, 4  ;;  %s1440_s17 = smov [#allocation13]   ;;  %s1556_s16 = int_to_ptr.vmem [resolvable:$true] %s257_s16 }
  0x19   : > { %p1552_p11 = pnand %p1103_p9, %p1857_p1  ;;  %s1558_s18 = sshll.u32 %s1440_s17, 4  ;;  %s271_s18 = int_to_ptr.vmem [resolvable:$true] %s1558_s18 }
  0x1a   : > { %s1873_s2 = sld [smem:[#allocation23_spill]] }
  0x1b   : > { %p1568_p13 = pneg %p1552_p11 }
  0x20   : > { %s1198_s21 = scalar_lea.hbm %s1873_s2, 512 }
  0x21   : > { %p1199_p12 = scmp.ne.s32.totalorder %s1873_s2, %s1198_s21  ;;  %p1205_p5 = scmp.lt.u32.totalorder %s1198_s21, %s1873_s2 }
  0x23   : > { %p1201_p0 = pnand %p1568_p13, %p1199_p12 }
  0x25   : > { %p1202_p3 = pneg %p1201_p0 }
  0x27   : > { %p1207_p7 = pnand %p1205_p5, %p1202_p3 }
  0x29   : > { %1210 = shalt.err (!%p1207_p7)
}
  0x2a   : > { %s1211_s17 = scalar_lea.vmem %s1545_s13, 512  ;;  %p1219_p2 = scmp.lt.s32.totalorder %s1545_s13, %s1545_s13 }
  0x2b   : > { %p1212_p9 = scmp.ne.s32.totalorder %s1545_s13, %s1211_s17  ;;  %p1220_p6 = scmp.lt.s32.totalorder %s1211_s17, %s1211_s17 }
  0x2d   : > { %p1214_p10 = pnand %p1212_p9, %p1568_p13  ;;  %p1221_p12 = por %p1220_p6, %p1219_p2 }
  0x2f   : > { %p1215_p1 = pneg %p1214_p10 }
  0x31   : > { %p1222_p0 = pnand %p1221_p12, %p1215_p1 }
  0x33   : > { %1225 = shalt.err (!%p1222_p0)
}
  0x34   : > { %s1441_s19 = smov 128   ;;  %s1442_s20 = smov 8  }
  0x35   : > { %1106 = dma.hbm_to_vmem [thread:$0]  (!%p1552_p11), %s1873_s2, 512, %s1545_s13, [#allocation9], %s1441_s19, %s1441_s19, %s1442_s20  }
  0x36   : > { %s1226_s15 = scalar_lea.hbm %s1853_s4, 512 }
  0x37   : > { %p1227_p1 = scmp.ne.s32.totalorder %s1853_s4, %s1226_s15  ;;  %p1233_p10 = scmp.lt.u32.totalorder %s1226_s15, %s1853_s4 }
  0x39   : > { %p1229_p2 = pnand %p1227_p1, %p1568_p13 }
  0x3b   : > { %p1230_p6 = pneg %p1229_p2 }
  0x3d   : > { %p1235_p3 = pnand %p1233_p10, %p1230_p6 }
  0x3f   : > { %1238 = shalt.err (!%p1235_p3)
}
  0x40   : > { %s1239_s13 = scalar_lea.vmem %s1556_s16, 512  ;;  %p1247_p12 = scmp.lt.s32.totalorder %s1556_s16, %s1556_s16 }
  0x41   : > { %p1240_p5 = scmp.ne.s32.totalorder %s1556_s16, %s1239_s13  ;;  %p1248_p0 = scmp.lt.s32.totalorder %s1239_s13, %s1239_s13 }
  0x43   : > { %p1242_p7 = pnand %p1240_p5, %p1568_p13  ;;  %p1249_p1 = por %p1248_p0, %p1247_p12 }
  0x45   : > { %p1243_p9 = pneg %p1242_p7 }
  0x47   : > { %p1250_p2 = pnand %p1249_p1, %p1243_p9 }
  0x49   : > { %1253 = shalt.err (!%p1250_p2)
}
  0x4a   : > { %1109 = dma.hbm_to_vmem [thread:$0]  (!%p1552_p11), %s1853_s4, 512, %s1556_s16, [#allocation12], %s1441_s19, %s1441_s19, %s1442_s20  }
  0x4b   : > { %s1254_s22 = scalar_lea.hbm %s1854_s5, 512 }
  0x4c   : > { %p1255_p6 = scmp.ne.s32.totalorder %s1854_s5, %s1254_s22  ;;  %p1261_p5 = scmp.lt.u32.totalorder %s1254_s22, %s1854_s5 }
  0x4e   : > { %p1257_p10 = pnand %p1255_p6, %p1568_p13 }
  0x50   : > { %p1258_p3 = pneg %p1257_p10 }
  0x52   : > { %p1263_p7 = pnand %p1261_p5, %p1258_p3 }
  0x54   : > { %1266 = shalt.err (!%p1263_p7)
}
  0x55   : > { %s1267_s13 = scalar_lea.vmem %s271_s18, 512  ;;  %p1275_p1 = scmp.lt.s32.totalorder %s271_s18, %s271_s18 }
  0x56   : > { %p1268_p9 = scmp.ne.s32.totalorder %s271_s18, %s1267_s13  ;;  %p1276_p2 = scmp.lt.s32.totalorder %s1267_s13, %s1267_s13 }
  0x58   : > { %p1270_p12 = pnand %p1268_p9, %p1568_p13  ;;  %p1277_p4 = por %p1276_p2, %p1275_p1 }
  0x5a   : > { %p1271_p0 = pneg %p1270_p12 }
  0x5c   : > { %p1278_p8 = pnand %p1277_p4, %p1271_p0 }
  0x5e   : > { %1281 = shalt.err (!%p1278_p8)
}
  0x5f   : > { %1112 = dma.hbm_to_vmem [thread:$0]  (!%p1552_p11), %s1854_s5, 512, %s271_s18, [#allocation12], %s1441_s19, %s1441_s19, %s1442_s20  }
  0x60   : > { %s46_s8 = sadd.s32 1, %s1424_s26  ;;  %s39_s14 = sadd.s32 1, %s1432_s28 }
  0x61   : > { %p53_p4 = scmp.ne.s32.totalorder %s1424_s26, %s1420_s25  ;;  %p41_p8 = scmp.ge.s32.totalorder %s39_s14, 2 }
  0x62   : > { %p54_p13 = scmp.eq.s32.totalorder %s1436_s29, 0  ;;  %p1875_p6 = scmp.eq.s32.totalorder %s1522_s30, 1 }
  0x63   : > { %p1127_p3 = scmp.lt.s32.totalorder %s1436_s29, 2  ;;  %s1898_s14 = smov (%p41_p8, %s39_s14), 0 }
  0x64   : > { %p1647_p10 = por %p1875_p6, %p53_p4  ;;  %p55_p5 = por %p54_p13, %p53_p4 }
  0x65   : > { %s1655_s10 = sand.u32 1, %s1424_s26   ;;  %s43_s18 = ssub.s32 %s1432_s28, %s1898_s14 }
  0x66   : > { %s1876_s24 = scalar_select %p1647_p10, 1, 0 }
  0x67   : > { %p44_p11 = scmp.eq.s32.totalorder %s43_s18, 0  ;;  %s987_s19 = sshll.u32 %s1432_s28, 4 }
  0x68   : > { %s290_s20 = scalar_lea.vmem [#allocation5], %s1655_s10  ;;  %s1877_s0 = sld [smem:[#allocation22_spill]] }
  0x69   : > { %s297_s21 = sshll.u32 %s290_s20, 4  ;;  %p1671_p7 = pnand %p1127_p3, %p55_p5  ;;  %s1669_s21 = int_to_ptr.vmem [resolvable:$true] %s297_s21 }
  0x6a   : > { %s1662_s22 = scalar_select %p44_p11, %s1424_s26, %s46_s8  }
  0x6b   : > { %s988_s16 = sshll.u32 %s1655_s10, 3  ;;  %s288_s7 = scalar_lea.sflag [#allocation6], %s1655_s10 }
  0x6c   : > { %p1284_p12 = pneg %p1671_p7 }
  0x6e   : > { %s1667_s15 = scalar_lea.hbm %s1877_s0, %s987_s19  ;;  %s1287_s20 = scalar_lea.hbm %s1877_s0, 32 }
  0x6f   : > { %s1282_s8 = scalar_lea.hbm %s1667_s15, 16  ;;  %p1288_p2 = scmp.lt.u32.totalorder %s1667_s15, %s1877_s0 }
  0x70   : > { %p1283_p9 = scmp.ne.s32.totalorder %s1667_s15, %s1282_s8  ;;  %p1289_p4 = scmp.lt.u32.totalorder %s1287_s20, %s1282_s8 }
  0x71   : > { %p1291_p13 = scmp.lt.u32.totalorder %s1282_s8, %s1667_s15 }
  0x72   : > { %p1285_p0 = pnand %p1284_p12, %p1283_p9  ;;  %p1290_p8 = por %p1289_p4, %p1288_p2 }
  0x74   : > { %p1286_p1 = pneg %p1285_p0  ;;  %p1292_p6 = por %p1291_p13, %p1290_p8 }
  0x76   : > { %p1293_p3 = pnand %p1292_p6, %p1286_p1 }
  0x78   : > { %1296 = shalt.err (!%p1293_p3)
}
  0x79   : > { %s1297_s13 = scalar_lea.vmem %s1669_s21, 16  ;;  %s1443_s18 = smov [#allocation5]  }
  0x7a   : > { %p1298_p5 = scmp.ne.s32.totalorder %s1669_s21, %s1297_s13  ;;  %s1302_s19 = sshll.u32 %s1443_s18, 4  ;;  %s1303_s19 = int_to_ptr.vmem [resolvable:$false] %s1302_s19 }
  0x7b   : > { %s1304_s23 = scalar_lea.vmem %s1303_s19, 32  ;;  %p1305_p0 = scmp.lt.s32.totalorder %s1669_s21, %s1303_s19 }
  0x7c   : > { %p1300_p11 = pnand %p1298_p5, %p1284_p12  ;;  %p1306_p2 = scmp.lt.s32.totalorder %s1304_s23, %s1297_s13 }
  0x7e   : > { %p1301_p9 = pneg %p1300_p11  ;;  %p1307_p4 = por %p1306_p2, %p1305_p0 }
  0x80   : > { %p1308_p8 = pnand %p1307_p4, %p1301_p9 }
  0x82   : > { %1311 = shalt.err (!%p1308_p8)
}
  0x83   : > { %1116 = dma.hbm_to_vmem [thread:$0]  (!%p1671_p7), %s1667_s15, 16, %s1669_s21, %s288_s7  }
  0x84   : > { %s989_s8 = sshll.u32 %s1432_s28, 7  ;;  %s308_s20 = scalar_lea.vmem [#allocation8], %s988_s16 }
  0x85   : > { %s316_s12 = sshll.u32 %s308_s20, 4  ;;  %s1709_s13 = scalar_lea.hbm %s1850_s1, %s989_s8  ;;  %s317_s12 = int_to_ptr.vmem [resolvable:$true] %s316_s12 }
  0x86   : > { %s1879_s19 = sand.u32 1, %s1436_s29   ;;  %s1312_s2 = scalar_lea.hbm %s1709_s13, 128 }
  0x87   : > { %s305_s23 = scalar_lea.sflag [#allocation9], %s1879_s19  ;;  %p1313_p1 = scmp.ne.s32.totalorder %s1709_s13, %s1312_s2 }
  0x88   : > { %s1317_s15 = scalar_lea.hbm %s1850_s1, 256  ;;  %p1318_p3 = scmp.lt.u32.totalorder %s1709_s13, %s1850_s1 }
  0x89   : > { %p1315_p13 = pnand %p1313_p1, %p1284_p12  ;;  %p1319_p5 = scmp.lt.u32.totalorder %s1317_s15, %s1312_s2 }
  0x8a   : > { %p1321_p9 = scmp.lt.u32.totalorder %s1312_s2, %s1709_s13 }
  0x8b   : > { %p1316_p6 = pneg %p1315_p13  ;;  %p1320_p11 = por %p1319_p5, %p1318_p3 }
  0x8d   : > { %p1322_p0 = por %p1321_p9, %p1320_p11 }
  0x8f   : > { %p1323_p2 = pnand %p1322_p0, %p1316_p6 }
  0x91   : > { %1326 = shalt.err (!%p1323_p2)
}
  0x92   : > { %s1327_s7 = scalar_lea.vmem %s317_s12, 128  ;;  %s1444_s8 = smov [#allocation8]  }
  0x93   : > { %p1328_p4 = scmp.ne.s32.totalorder %s317_s12, %s1327_s7  ;;  %s1332_s20 = sshll.u32 %s1444_s8, 4  ;;  %s1333_s20 = int_to_ptr.vmem [resolvable:$false] %s1332_s20 }
  0x94   : > { %s1334_s18 = scalar_lea.vmem %s1333_s20, 256  ;;  %p1335_p13 = scmp.lt.s32.totalorder %s317_s12, %s1333_s20 }
  0x95   : > { %p1330_p8 = pnand %p1328_p4, %p1284_p12  ;;  %p1336_p10 = scmp.lt.s32.totalorder %s1334_s18, %s1327_s7 }
  0x97   : > { %p1331_p1 = pneg %p1330_p8  ;;  %p1337_p3 = por %p1336_p10, %p1335_p13 }
  0x99   : > { %p1338_p5 = pnand %p1337_p3, %p1331_p1 }
  0x9b   : > { %1341 = shalt.err (!%p1338_p5)
}
  0x9c   : > { %1119 = dma.hbm_to_vmem [thread:$0]  (!%p1671_p7), %s1709_s13, 128, %s317_s12, %s305_s23  }
  0x9d   : > { %p1880_p6 = scmp.ne.s32.totalorder %s1871_s11, 0 }
  0x9e   : > { %s1735_s2 = sand.u32 (!%p1880_p6), 1, %s1420_s25   ;;  %p1881_p12 = scmp.ne.s32.totalorder (!%p1880_p6), %s1868_s9, 0 }
  0x9f   : > { %325 = sbr.rel (%p1880_p6) target bundleno = 1654 (0x676), region = 48  ;;  %s328_s19 = scalar_lea.sflag (!%p1880_p6), [#allocation6], %s1735_s2 }
  0xa0   : > { %s330_s10 = scalar_lea.vmem (!%p1880_p6), [#allocation5], %s1735_s2 }
  0xa6   : > { %1395 = dma.done.wait (%p1881_p12), %s328_s19, 16  }
  0xa7   : > { %1397 = vsyncadd (%p1881_p12), %s328_s19, 4294967280  ;;  %s335_s17 = sand.u32 1, %s1522_s30   ;;  %s991_s12 = sshll.u32 %s1735_s2, 3 }
  0xa8   : > { %s336_s11 = scalar_lea.sflag [#allocation9], %s335_s17  ;;  %s339_s13 = scalar_lea.vmem [#allocation8], %s991_s12 }
  0xa9   : > { %1399 = dma.done.wait (%p1881_p12), %s336_s11, 128  }
  0xaa   : > { %1401 = vsyncadd (%p1881_p12), %s336_s11, 4294967168  ;;  %p1882_p10 = scmp.eq.s32.totalorder %s1522_s30, 0 }
  0xac   : > { %1403 = dma.done.wait (%p1882_p10), [#allocation9], 512   ;;  %p1883_p7 = pmov %p1882_p10 }
  0xae   : > { %1405 = vsyncadd (%p1883_p7), [#allocation9], 4294966784  ;;  %p1884_p11 = pmov %p1883_p7 }
  0xaf   : > { %p1885_p9 = pmov %p1883_p7 }
  0xb0   : > { %1407 = dma.done.wait (%p1884_p11), [#allocation12], 1024  }
  0xb1   : > { %1409 = vsyncadd (%p1885_p9), [#allocation12], 4294966272  ;;  %vm392_vm0 = vcmask 261120   ;;  %v1445_v0 = vmov 0.0|0.0   ;;  %vm1446_vm1 = vmmov 0   ;;  %v1447_v1 = vmov 0.0  }
  0xb2   : > { %1067 = vmatprep.subr.bf16.mxu0 %v1445_v0  ;;  %1032 = vmatprep.mubr.msk.f32.mxu0 %vm1446_vm1, %v1447_v1  ;;  %393 = vst.msk [vmem:[#allocation4] sm:$0xff] %vm392_vm0, %v1447_v1  ;;  %v395_v2 = vld [vmem:[#allocation10] sm:$0xff]  ;;  %v396_v3 = vld [vmem:[#allocation10 + $0x8] sm:$0xff]  ;;  %v397_v4 = vld [vmem:[#allocation10 + $0x10] sm:$0xff]  ;;  %vm389_vm2 = vcmask 7168   ;;  %v1448_v14 = vmov -inf  }
  0xb3   : > { %1035 = vmatprep.subr.mxu1 %v1447_v1  ;;  %1037 = vmatprep.mubr.msk.f32.mxu1 %vm1446_vm1, %v1447_v1  ;;  %v1068_v5 = vpack.c.bf16 %v396_v3, %v395_v2  ;;  %v398_v6 = vld [vmem:[#allocation10 + $0x18] sm:$0xff]  ;;  %v996_v9 = vld [vmem:[%s330_s10] ss:$0 sm:$0xff]  ;;  %390 = vst.msk [vmem:[#allocation2] sm:$0xff] %vm389_vm2, %v1448_v14  ;;  %391 = vst.msk [vmem:[#allocation3] sm:$0xff] %vm389_vm2, %v1447_v1  ;;  %vm559_vm3 = vcmask 64512  }
  0xb4   : > { %v1071_v7 = vpack.c.bf16 %v398_v6, %v397_v4  ;;  %v394_v8 = vld [vmem:[%s339_s13] sm:$0xff]  ;;  %v1449_v18 = vmov 0   ;;  %v678_v30 = vld [vmem:[#allocation11] sm:$0xff]  ;;  %v679_v31 = vld [vmem:[#allocation11 + $0x8] sm:$0xff]  ;;  %s1002_s15 = sshll.u32 %s1428_s27, 4  ;;  %s384_s0 = scalar_lea.vmem [#allocation14], %s1735_s2 }
  0xb5   : > { %1069 = vmatpush3.bf16.msra.mxu0 %v1068_v5  ;;  %v1771_v13 = vld [vmem:[%s1852_s3] sm:$0xff]  ;;  %1190 = vset.pattern.permute.xlu0 %v1449_v18  ;;  %v1074_v33 = vpack.c.bf16 %v679_v31, %v678_v30  ;;  %v681_v34 = vld [vmem:[#allocation11 + $0x18] sm:$0xff]  ;;  %v764_v51 = vld [vmem:[#allocation13] sm:$0xff]  ;;  %s857_s16 = sshll.u32 %s384_s0, 4  ;;  %vm842_vm4 = vcmask 253952   ;;  %s1886_s20 = sld [smem:[#allocation24_spill]]  ;;  %s1802_s16 = int_to_ptr.vmem [resolvable:$true] %s857_s16 }
  0xb6   : > { %1070 = vmatprep.subr.bf16.mxu0 %v1445_v0  ;;  %1191 = vset.pattern.permute.xlu1 %v1449_v18  ;;  %v680_v32 = vld [vmem:[#allocation11 + $0x10] sm:$0xff]  ;;  %v765_v52 = vld [vmem:[#allocation13 + $0x8] sm:$0xff]  ;;  %v767_v55 = vld [vmem:[#allocation13 + $0x18] sm:$0xff]  ;;  %s845_s19 = scalar_lea.sflag [#allocation7], %s1735_s2  ;;  %s1342_s10 = scalar_lea.vmem %s1802_s16, 16 }
  0xb7   : > { %v1077_v35 = vpack.c.bf16 %v681_v34, %v680_v32  ;;  %v1080_v53 = vpack.c.bf16 %v765_v52, %v764_v51  ;;  %v766_v54 = vld [vmem:[#allocation13 + $0x10] sm:$0xff]  ;;  %p1343_p0 = scmp.ne.s32.totalorder %s1802_s16, %s1342_s10  ;;  %p1887_p2 = scmp.ne.s32.totalorder %s1876_s24, 0 }
  0xb8   : > { %v1083_v56 = vpack.c.bf16 %v767_v55, %v766_v54  ;;  %s1450_s27 = smov [#allocation14]  }
  0xb9   : > { %1072 = vmatpush3.bf16.msra.mxu0 %v1071_v7  ;;  %v584_v42 = vld [vmem:[#allocation4] sm:$0xff]  ;;  %p1344_p4 = pnand %p1343_p0, %p1887_p2  ;;  %s1346_s17 = sshll.u32 %s1450_s27, 4  ;;  %s1347_s17 = int_to_ptr.vmem [resolvable:$false] %s1346_s17 }
  0xba   : > { %1073 = vmatprep.subr.bf16.mxu0 %v1445_v0  ;;  %v558_v19 = vld [vmem:[#allocation2] sm:$0xff]  ;;  %v575_v36 = vld [vmem:[#allocation3] sm:$0xff]  ;;  %s1348_s12 = scalar_lea.vmem %s1347_s17, 32  ;;  %p1349_p1 = scmp.lt.s32.totalorder %s1802_s16, %s1347_s17 }
  0xbb   : > { %s1800_s18 = scalar_lea.hbm %s1886_s20, %s1002_s15  ;;  %p1345_p8 = pneg %p1344_p4 }
  0xbc   : > { %1033 = vmatmul.mubr.msk.f32.vlgmr.msra.gmra.mrb[0].mxu0 %vm392_vm0, %v394_v8  ;;  %p1350_p13 = scmp.lt.s32.totalorder %s1348_s12, %s1342_s10 }
  0xbd   : > { %1053 = vmatprep.mubr.msk.f32.mxu0 %vm1446_vm1, %v1447_v1  ;;  %1075 = vmatpush3.bf16.msra.mxu0 %v1074_v33 }
  0xbe   : > { %1076 = vmatprep.subr.bf16.mxu0 %v1445_v0  ;;  %p1351_p3 = por %p1350_p13, %p1349_p1 }
  0xc0   : > { %p1352_p5 = pnand %p1351_p3, %p1345_p8 }
  0xc1   : > { %1078 = vmatpush3.bf16.msra.mxu0 %v1077_v35 }
 0x18f   : > { %v469_v10 = vpop.f32.mrb[0].mxu0 }
 0x190   : > { %v480_v11 = vmul.f32 %v996_v9, %v469_v10  ;;  %v1034_v12 = vpop.f32.mrb[1].mxu0 }
 0x192   : > { %1036 = vmatpush3.xpose.msk.msra.mxu1 %vm392_vm0, %v480_v11 }
 0x193   : > { %1040 = vmatprep.subr.mxu1 %v1447_v1 }
 0x195   : > { %1038 = vmatmul.mubr.msk.f32.vlgmr.msra.gmra.mrb[0].mxu1 %vm392_vm0, %v1771_v13 }
 0x196   : > { %1041 = vmatpush3.msra.mxu1 %v394_v8  ;;  %1042 = vmatprep.mubr.msk.f32.mxu1 %vm1446_vm1, %v1447_v1 }
 0x197   : > { %1079 = vmatprep.subr.bf16.mxu1 %v1445_v0 }
 0x268   : > { %v554_v15 = vpop.f32.mrb[0].mxu1 }
 0x269   : > { %v1039_v16 = vpop.f32.mrb[1].mxu1  ;;  %v560_v17 = vsel %vm559_vm3, %v554_v15, -inf }
 0x26a   : > { %561 = vmax.xlane.f32.xlu0 %v560_v17 }
 0x2f7   : > { %v562_v20 = vpop.xlane.xlu0 %561 }
 0x2f8   : > { %v563_v21 = vmax.f32 %v558_v19, %v562_v20 }
 0x2fa   : > { %v564_v22 = vsub.f32 %v558_v19, %v563_v21  ;;  %583 = vst.msk [vmem:[#allocation2] sm:$0xff] %vm389_vm2, %v563_v21  ;;  %569 = vperm.xlu0 %1190, %v563_v21  }
 0x2fc   : > { %v565_v28 = vmul.f32 1.442695, %v564_v22 }
 0x379   : > { %v570_v23 = vpop.permute.xlu0 %569 }
 0x37a   : > { %v572_v24 = vsub.f32 %v554_v15, %v570_v23 }
 0x37c   : > { %v573_v25 = vmul.f32 1.442695, %v572_v24 }
 0x37e   : > { %1192 = vpow2.f32 %v573_v25 }
 0x37f   : > { %1194 = vpow2.f32 %v565_v28 }
 0x388   : > { %v1193_v26 = vpop.eup %1192 }
 0x389   : > { %1043 = vmatmul.mubr.msk.f32.vlgmr.msra.gmra.mrb[2].mxu1 %vm559_vm3, %v1193_v26  ;;  %v577_v27 = vsel %vm559_vm3, %v1193_v26, 0.0  ;;  %v1195_v29 = vpop.eup %1194 }
 0x38a   : > { %578 = vadd.xlane.f32.xlu1 %v577_v27  ;;  %1064 = vmatprep.mubr.msk.f32.mxu1 %vm1446_vm1, %v1447_v1  ;;  %v576_v37 = vmul.f32 %v1195_v29, %v575_v36 }
 0x38b   : > { %1081 = vmatpush3.bf16.msra.mxu1 %v1080_v53 }
 0x38c   : > { %1082 = vmatprep.subr.bf16.mxu1 %v1445_v0  ;;  %v768_v0 = vld [vmem:[%s1855_s6] sm:$0x1] }
 0x38f   : > { %1084 = vmatpush3.bf16.msra.mxu1 %v1083_v56 }
 0x39b   : > { %587 = vperm.xlu1 %1191, %v1195_v29  }
 0x417   : > { %v579_v38 = vpop.xlane.xlu1 %578 }
 0x418   : > { %v580_v39 = vadd.f32 %v579_v38, %v576_v37 }
 0x41a   : > { %582 = vst.msk [vmem:[#allocation3] sm:$0xff] %vm389_vm2, %v580_v39 }
 0x41b   : > { %v588_v43 = vpop.permute.xlu1 %587 }
 0x41c   : > { %v590_v44 = vmul.f32 %v588_v43, %v584_v42 }
 0x421   : > { %v669_v40 = vld [vmem:[#allocation3] sm:$0xff] }
 0x422   : > { %1196 = vrcp.f32 %v669_v40 }
 0x42c   : > { %v1197_v41 = vpop.eup %1196 }
 0x42d   : > { %674 = vperm.xlu1 %1191, %v1197_v41  }
 0x45c   : > { %v660_v45 = vpop.f32.mrb[2].mxu1 }
 0x45d   : > { %v664_v46 = vadd.f32 %v660_v45, %v590_v44  ;;  %v1044_v47 = vpop.f32.mrb[3].mxu1 }
 0x45f   : > { %665 = vst.msk [vmem:[#allocation4] sm:$0xff] %vm392_vm0, %v664_v46 }
 0x466   : > { %v671_v48 = vld [vmem:[#allocation4] sm:$0xff] }
 0x4ac   : > { %v675_v49 = vpop.permute.xlu1 %674 }
 0x4ad   : > { %v677_v50 = vmul.f32 %v675_v49, %v671_v48 }
 0x4af   : > { %1054 = vmatmul.mubr.msk.f32.vlgmr.msra.gmra.mrb[2].mxu0 %vm392_vm0, %v677_v50 }
 0x582   : > { %v751_v57 = vpop.f32.mrb[2].mxu0 }
 0x583   : > { %v756_v58 = vmul.f32 %v751_v57, %v1771_v13  ;;  %v1055_v59 = vpop.f32.mrb[3].mxu0 }
 0x585   : > { %v757_v60 = vsel %vm392_vm0, %v756_v58, 0.0 }
 0x586   : > { %v758_v61 = vrot.slane %v757_v60, 4 }
 0x588   : > { %v759_v62 = vadd.f32 %v758_v61, %v757_v60 }
 0x58a   : > { %v760_v63 = vrot.slane %v759_v62, 2 }
 0x58c   : > { %v761_v1 = vadd.f32 %v760_v63, %v759_v62 }
 0x58e   : > { %v762_v2 = vrot.slane %v761_v1, 1 }
 0x590   : > { %v763_v3 = vadd.f32 %v762_v2, %v761_v1 }
 0x592   : > { %1065 = vmatmul.mubr.msk.f32.vlgmr.msra.gmra.mrb[4].mxu1 %vm392_vm0, %v763_v3 }
 0x665   : > { %v838_v4 = vpop.f32.mrb[4].mxu1 }
 0x666   : > { %v839_v5 = vadd.f32 %v838_v4, %v768_v0  ;;  %v1066_v6 = vpop.f32.mrb[5].mxu1 }
 0x668   : > { %843 = vst.msk [vmem:[%s384_s0] sm:$0x1] %vm842_vm4, %v839_v5 }
 0x669   : > { %1355 = shalt.err (!%p1352_p5)
}
 0x66a   : > { %s1356_s2 = scalar_lea.hbm %s1800_s18, 16  ;;  %s1360_s30 = scalar_lea.hbm %s1886_s20, 32 }
 0x66b   : > { %p1357_p6 = scmp.ne.s32.totalorder %s1800_s18, %s1356_s2  ;;  %p1361_p7 = scmp.lt.u32.totalorder %s1800_s18, %s1886_s20 }
 0x66c   : > { %p1362_p11 = scmp.lt.u32.totalorder %s1360_s30, %s1356_s2  ;;  %p1364_p0 = scmp.lt.u32.totalorder %s1356_s2, %s1800_s18 }
 0x66d   : > { %p1358_p12 = pnand %p1357_p6, %p1887_p2 }
 0x66e   : > { %p1363_p9 = por %p1362_p11, %p1361_p7 }
 0x66f   : > { %p1359_p10 = pneg %p1358_p12 }
 0x670   : > { %p1365_p4 = por %p1364_p0, %p1363_p9 }
 0x672   : > { %p1366_p8 = pnand %p1365_p4, %p1359_p10 }
 0x674   : > { %1369 = shalt.err (!%p1366_p8)
}
 0x675   : > { %1101 = dma.vmem_to_hbm [thread:$0]  (%p1887_p2), %s1802_s16, 16, %s1800_s18, %s845_s19  }
 0x676 PF: > { %s1888_s21 = sld [smem:[#allocation20_spill]]  ;;  %s1889_s15 = sld [smem:[#allocation21_spill]] }
 0x677   : > { %p1891_p13 = scmp.ge.s32.totalorder %s1436_s29, 2 }
 0x67c   : > { %s869_s0 = sand.u32 1, %s1888_s21   ;;  %p1890_p1 = scmp.ne.s32.totalorder %s1889_s15, 0 }
 0x67d   : > { %s870_s7 = scalar_lea.sflag [#allocation7], %s869_s0 }
 0x67e   : > { %p1121_p3 = pnand %p1891_p13, %p1890_p1 }
 0x680   : > { %1411 = dma.done.wait (!%p1121_p3), %s870_s7, 16  }
 0x681   : > { %1413 = vsyncadd (!%p1121_p3), %s870_s7, 4294967280  ;;  %s27_s29 = sadd.s32 1, %s1436_s29   ;;  %s1892_s24 = smov %s1420_s25 }
 0x682   : > { %p24_p5 = scmp.ge.s32.totalorder %s27_s29, 4   ;;  %s1893_s25 = smov %s1424_s26 }
 0x683   : > { %s1894_s26 = smov %s1662_s22  ;;  %s1895_s27 = smov %s1432_s28 }
 0x684   : > { %s1896_s28 = smov %s1898_s14  ;;  %26 = sbr.rel (!%p24_p5) target bundleno = 13 (0xd), region = 126 }
 0x68b   :  { %874 = vsyncpa [#allocation6], 1 }
 0x68c   :  { %876 = vsyncpa [#allocation6 + $0x1], 1 }
 0x68d   :  { %877 = vsyncpa [#allocation9], 1 }
 0x68e   :  { %879 = vsyncpa [#allocation9 + $0x1], 1 }
 0x68f   :  { %880 = vsyncpa [#allocation12], 1 }
 0x690   :  { %881 = vsyncpa [#allocation7], 1 }
 0x691   :  { %883 = vsyncpa [#allocation7 + $0x1], 1 }

</bundles_post_ra>
